<compile_context>
chip_gen: v7x
topology: tpu7x:2x2x1
jax: 0.10.0
libtpu: 0.0.40
codegen_flags: <defaults>
</compile_context>

<pallas_src>
import functools

import jax
import jax.numpy as jnp
from jax import lax
from jax.experimental import pallas as pl
from jax.experimental.pallas import tpu as pltpu

EPS = 1e-5
LANE = 128


def _round_up(x, m):
    return (x + m - 1) // m * m


# ------------------------------ Fused kernel ------------------------------- #

def fused_bottleneck_kernel(H, W,
                            x_ref, w1_ref, b1_ref, w2_ref, b2_ref,
                            w3_ref, b3_ref, o_ref, y1p_ref, acc_ref):
    # Per grid step (B images):
    #   x_ref : (B, H*W, CinP)        f32   (also the residual identity)
    #   w1    : (CinP, WP)            bf16  (BN1 scale folded in)
    #   b1    : (1, WP)               f32   (BN1 shift)
    #   w2    : (9*WP, WP)            bf16  (3x3 HWIO flattened, BN2 folded)
    #   b2    : (1, WP)               f32
    #   w3    : (WP, CoutP)           bf16  (BN3 scale folded)
    #   b3    : (1, CoutP)            f32
    #   o_ref : (B, H*W, CoutP)
    #   y1p   : (B*(H+2), W+2, WP)    f32 VMEM scratch (1-px haloed stage-1 out)
    #   acc   : (B*H*W, WP)           f32 VMEM scratch (stage-2 accumulator)
    B, HW, CinP = x_ref.shape
    WP = w1_ref.shape[1]
    CoutP = w3_ref.shape[1]
    M = B * HW
    HP = H + 2

    # ---- stage 1: 1x1 conv (BN1 folded) + shift + ReLU, batched over B ----- #
    xb = x_ref[...].reshape(M, CinP).astype(jnp.bfloat16)
    y1 = jnp.dot(xb, w1_ref[...], preferred_element_type=jnp.float32)
    y1 = jnp.maximum(y1 + b1_ref[...], 0.0)
    y1 = y1.reshape(B, H, W, WP)

    # ---- scatter stage-1 output into the haloed scratch (border-only zero) - #
    zrow = jnp.zeros((1, W + 2, WP), jnp.float32)
    zcol = jnp.zeros((H, 1, WP), jnp.float32)
    for i in range(B):                                   # static, small
        r0 = i * HP
        y1p_ref[pl.ds(r0, 1), :, :] = zrow               # top halo row
        y1p_ref[pl.ds(r0 + H + 1, 1), :, :] = zrow       # bottom halo row
        y1p_ref[pl.ds(r0 + 1, H), pl.ds(0, 1), :] = zcol          # left halo
        y1p_ref[pl.ds(r0 + 1, H), pl.ds(W + 1, 1), :] = zcol      # right halo
        y1p_ref[pl.ds(r0 + 1, H), pl.ds(1, W), :] = y1[i]         # interior

    # ---- stage 2: 3x3 conv (BN2 folded) as 9 accumulating MXU matmuls ------ #
    # Tap (dy, dx) reads a statically shifted (H, W, WP) window of the haloed
    # scratch; weight rows [t*WP, (t+1)*WP) are that tap's (WP, WP) block
    # (dy-major, dx, then input channel -- matches HWIO flattening).
    for i in range(B):
        r0 = i * HP
        rows = pl.ds(i * HW, HW)
        for t in range(9):
            dy, dx = t // 3, t % 3
            tap = y1p_ref[pl.ds(r0 + dy, H), pl.ds(dx, W), :]
            tap = tap.reshape(HW, WP).astype(jnp.bfloat16)
            part = jnp.dot(tap, w2_ref[pl.ds(t * WP, WP), :],
                           preferred_element_type=jnp.float32)
            if t == 0:
                acc_ref[rows, :] = part                  # no separate zeroing
            else:
                acc_ref[rows, :] += part

    # ---- stage 2 epilogue + stage 3: 1x1 conv + residual (f32) + ReLU ------ #
    y2 = jnp.maximum(acc_ref[...] + b2_ref[...], 0.0).astype(jnp.bfloat16)
    y3 = jnp.dot(y2, w3_ref[...], preferred_element_type=jnp.float32)
    res = x_ref[...].reshape(M, CinP)        # re-read residual in f32 (CinP==CoutP)
    out = jnp.maximum(y3 + b3_ref[...] + res, 0.0)
    o_ref[...] = out.astype(o_ref.dtype).reshape(B, HW, CoutP)


# -------------------------------- Wrapper ----------------------------------- #

def fold_bn(gamma, beta, mean, var):
    scale = gamma / jnp.sqrt(var + EPS)
    shift = beta - mean * scale
    return scale.astype(jnp.float32), shift.astype(jnp.float32)


def bottleneck_forward(x_nhwc, params, *, out_dtype=jnp.float32,
                       images_per_step=None):
    """x_nhwc: (N, H, W, Cin) float32; returns (N, H, W, out_channel*4)."""
    (w1, bn1, w2, bn2, w3, bn3) = params
    N, H, W, Cin = x_nhwc.shape
    width = w1.shape[1]
    Cout = w3.shape[1]
    HW = H * W
    # Residual add requires in_channel == out_channel * expansion (downsample=None).
    assert Cin == Cout, "identity residual needs Cin == Cout (no downsample)"

    # Pad channel dims to 128 lanes (lane-dense matmuls / stores).  At real
    # ResNet sizes these are already multiples of 128 and padding is a no-op.
    CinP = _round_up(Cin, LANE)
    WP = _round_up(width, LANE)
    CoutP = _round_up(Cout, LANE)

    s1, b1 = fold_bn(*bn1)
    s2, b2 = fold_bn(*bn2)
    s3, b3 = fold_bn(*bn3)

    # Fold BN scales into the conv weights, zero-pad, cast to bf16 for the MXU.
    w1f = jnp.zeros((CinP, WP), jnp.float32).at[:Cin, :width].set(
        w1 * s1[None, :]).astype(jnp.bfloat16)
    w2f = jnp.zeros((3, 3, WP, WP), jnp.float32).at[:, :, :width, :width].set(
        w2 * s2[None, None, None, :]).reshape(9 * WP, WP).astype(jnp.bfloat16)
    w3f = jnp.zeros((WP, CoutP), jnp.float32).at[:width, :Cout].set(
        w3 * s3[None, :]).astype(jnp.bfloat16)
    b1p = jnp.zeros((1, WP), jnp.float32).at[:, :width].set(b1[None, :])
    b2p = jnp.zeros((1, WP), jnp.float32).at[:, :width].set(b2[None, :])
    b3p = jnp.zeros((1, CoutP), jnp.float32).at[:, :Cout].set(b3[None, :])

    # Zero-pad input channels (no-op when Cin is already a multiple of 128).
    x_p = x_nhwc if Cin == CinP else jnp.pad(
        x_nhwc, ((0, 0), (0, 0), (0, 0), (0, CinP - Cin)))
    x_flat = x_p.reshape(N, HW, CinP)

    # Batch-block the grid so each step feeds the MXU >= ~256 rows at toy
    # sizes; at real sizes (HW large) one image per step keeps many parallel
    # grid steps for megacore sharding.
    if images_per_step is None:
        target = max(1, 256 // HW) if HW < 256 else 1
        images_per_step = 1
        for d in range(1, N + 1):
            if N % d == 0 and d <= target:
                images_per_step = d
    B = images_per_step
    assert N % B == 0

    out = pl.pallas_call(
        functools.partial(fused_bottleneck_kernel, H, W),
        out_shape=jax.ShapeDtypeStruct((N, HW, CoutP), out_dtype),
        grid=(N // B,),
        in_specs=[
            pl.BlockSpec((B, HW, CinP), lambda n: (n, 0, 0)),
            pl.BlockSpec((CinP, WP), lambda n: (0, 0)),
            pl.BlockSpec((1, WP), lambda n: (0, 0)),
            pl.BlockSpec((9 * WP, WP), lambda n: (0, 0)),
            pl.BlockSpec((1, WP), lambda n: (0, 0)),
            pl.BlockSpec((WP, CoutP), lambda n: (0, 0)),
            pl.BlockSpec((1, CoutP), lambda n: (0, 0)),
        ],
        out_specs=pl.BlockSpec((B, HW, CoutP), lambda n: (n, 0, 0)),
        scratch_shapes=[
            pltpu.VMEM((B * (H + 2), W + 2, WP), jnp.float32),  # haloed stage-1
            pltpu.VMEM((B * HW, WP), jnp.float32),              # stage-2 acc
        ],
        compiler_params=pltpu.CompilerParams(
            dimension_semantics=("parallel",),
            vmem_limit_bytes=48 * 1024 * 1024),
    )(x_flat, w1f, b1p, w2f, b2p, w3f, b3p)

    out = out[..., :Cout].reshape(N, H, W, Cout)
    return out.astype(jnp.float32)


# --------------------------- Pure-JAX reference ----------------------------- #

def reference_forward(x_nhwc, params):
    (w1, bn1, w2, bn2, w3, bn3) = params

    def bn(y, p):
        gamma, beta, mean, var = p
        return (y - mean) / jnp.sqrt(var + EPS) * gamma + beta

    dn = ("NHWC", "HWIO", "NHWC")
    y = lax.conv_general_dilated(x_nhwc, w1[None, None], (1, 1), "VALID",
                                 dimension_numbers=dn)
    y = jax.nn.relu(bn(y, bn1))
    y = lax.conv_general_dilated(y, w2, (1, 1), ((1, 1), (1, 1)),
                                 dimension_numbers=dn)
    y = jax.nn.relu(bn(y, bn2))
    y = lax.conv_general_dilated(y, w3[None, None], (1, 1), "VALID",
                                 dimension_numbers=dn)
    y = bn(y, bn3) + x_nhwc
    return jax.nn.relu(y)


# --------------------------------- Main ------------------------------------- #

def make_bn_params(c, base):
    gamma = 1.0 + 0.01 * (jnp.arange(c, dtype=jnp.float32) + base)
    beta = 0.01 * (jnp.arange(c, dtype=jnp.float32) - base)
    mean = 0.005 * jnp.arange(c, dtype=jnp.float32)
    var = 1.0 + 0.02 * jnp.arange(c, dtype=jnp.float32)
    return (gamma, beta, mean, var)


if __name__ == "__main__":
    key = jax.random.PRNGKey(0)
    k_x, k1, k2, k3 = jax.random.split(key, 4)

    # Small shapes consistent with the module: Bottleneck(in=64, out=16).
    N, H, W = 2, 8, 8
    out_channel = 16
    expansion = 4
    in_channel = out_channel * expansion          # 64 -> residual add is valid
    width = out_channel                           # groups=1, width_per_group=64

    # Deterministic synthetic parameters (no checkpoint load).
    w1 = 0.05 * jax.random.normal(k1, (in_channel, width), jnp.float32)              # 1x1
    w2 = 0.05 * jax.random.normal(k2, (3, 3, width, width), jnp.float32)             # 3x3 HWIO
    w3 = 0.05 * jax.random.normal(k3, (width, out_channel * expansion), jnp.float32) # 1x1
    params = (w1, make_bn_params(width, 1.0),
              w2, make_bn_params(width, 2.0),
              w3, make_bn_params(out_channel * expansion, 3.0))

    # Input (PyTorch would be NCHW (2, 64, 8, 8); kernel uses NHWC).
    x_nchw = jax.random.normal(k_x, (N, in_channel, H, W), jnp.float32)
    x_nhwc = jnp.transpose(x_nchw, (0, 2, 3, 1))

    out = jax.block_until_ready(bottleneck_forward(x_nhwc, params))
    ref = jax.block_until_ready(reference_forward(x_nhwc, params))

    assert out.shape == (N, H, W, out_channel * expansion)
    # bf16 MXU matmuls: tolerance relaxed vs the f32 reference (residual path f32-exact).
    assert jnp.allclose(out, ref, rtol=3e-2, atol=3e-2), "mismatch vs reference"

    print("KERNEL_OK")
</pallas_src>

<mosaic_0001>
module attributes {stable_mosaic.version = 11 : i64} {
  func.func @fused_bottleneck_kernel(%arg0: i32, %arg1: memref<2x64x128xf32, #tpu.memory_space<vmem>>, %arg2: memref<128x128xbf16, #tpu.memory_space<vmem>>, %arg3: memref<1x128xf32, #tpu.memory_space<vmem>>, %arg4: memref<1152x128xbf16, #tpu.memory_space<vmem>>, %arg5: memref<1x128xf32, #tpu.memory_space<vmem>>, %arg6: memref<128x128xbf16, #tpu.memory_space<vmem>>, %arg7: memref<1x128xf32, #tpu.memory_space<vmem>>, %arg8: memref<2x64x128xf32, #tpu.memory_space<vmem>>, %arg9: memref<20x10x128xf32, #tpu.memory_space<vmem>>, %arg10: memref<128x128xf32, #tpu.memory_space<vmem>>) attributes {dimension_semantics = [#tpu.dimension_semantics<parallel>], iteration_bounds = array<i64: 1>, scalar_prefetch = 0 : i64, scratch_operands = 2 : i64, tpu.core_type = #tpu.core_type<tc>, window_params = [{transform_indices = @transform_0, window_bounds = array<i64: 2, 64, 128>}, {pipeline_mode = #tpu.pipeline_mode<synchronous>, transform_indices = @transform_1, window_bounds = array<i64: 128, 128>}, {pipeline_mode = #tpu.pipeline_mode<synchronous>, transform_indices = @transform_2, window_bounds = array<i64: 1, 128>}, {pipeline_mode = #tpu.pipeline_mode<synchronous>, transform_indices = @transform_3, window_bounds = array<i64: 1152, 128>}, {pipeline_mode = #tpu.pipeline_mode<synchronous>, transform_indices = @transform_4, window_bounds = array<i64: 1, 128>}, {pipeline_mode = #tpu.pipeline_mode<synchronous>, transform_indices = @transform_5, window_bounds = array<i64: 128, 128>}, {pipeline_mode = #tpu.pipeline_mode<synchronous>, transform_indices = @transform_6, window_bounds = array<i64: 1, 128>}, {transform_indices = @transform_7, window_bounds = array<i64: 2, 64, 128>}]} {
    %c0 = arith.constant 0 : index
    %c0_0 = arith.constant 0 : index
    %c0_1 = arith.constant 0 : index
    %0 = vector.load %arg1[%c0, %c0_0, %c0_1] : memref<2x64x128xf32, #tpu.memory_space<vmem>>, vector<2x64x128xf32>
    %1 = vector.shape_cast %0 : vector<2x64x128xf32> to vector<128x128xf32>
    %2 = arith.truncf %1 : vector<128x128xf32> to vector<128x128xbf16>
    %c0_2 = arith.constant 0 : index
    %c0_3 = arith.constant 0 : index
    %3 = vector.load %arg2[%c0_2, %c0_3] : memref<128x128xbf16, #tpu.memory_space<vmem>>, vector<128x128xbf16>
    %cst = arith.constant dense<0.000000e+00> : vector<128x128xf32>
    %4 = tpu.matmul %2, %3, %cst {dimension_numbers = #tpu.dot_dimension_numbers<[1], [0], [0], [1], [0, 0, 1, 1], [], []>} : vector<128x128xbf16>, vector<128x128xbf16>, vector<128x128xf32> -> vector<128x128xf32>
    %c0_4 = arith.constant 0 : index
    %c0_5 = arith.constant 0 : index
    %5 = vector.load %arg3[%c0_4, %c0_5] : memref<1x128xf32, #tpu.memory_space<vmem>>, vector<1x128xf32>
    %6 = vector.broadcast %5 : vector<1x128xf32> to vector<128x128xf32>
    %7 = arith.addf %4, %6 : vector<128x128xf32>
    %cst_6 = arith.constant 0.000000e+00 : f32
    %8 = vector.broadcast %cst_6 : f32 to vector<128x128xf32>
    %9 = arith.maximumf %7, %8 : vector<128x128xf32>
    %10 = vector.shape_cast %9 : vector<128x128xf32> to vector<2x8x8x128xf32>
    %cst_7 = arith.constant 0.000000e+00 : f32
    %11 = vector.broadcast %cst_7 : f32 to vector<1x10x128xf32>
    %cst_8 = arith.constant 0.000000e+00 : f32
    %12 = vector.broadcast %cst_8 : f32 to vector<8x1x128xf32>
    %c0_9 = arith.constant 0 : index
    %c0_10 = arith.constant 0 : index
    %c0_11 = arith.constant 0 : index
    %13 = vector.load %arg9[%c0_9, %c0_10, %c0_11] : memref<20x10x128xf32, #tpu.memory_space<vmem>>, vector<1x10x128xf32>
    tpu.vector_store %arg9[%c0_9, %c0_10, %c0_11], %11 {strides = array<i32>} : memref<20x10x128xf32, #tpu.memory_space<vmem>>, vector<1x10x128xf32>,
    %c9 = arith.constant 9 : index
    %c0_12 = arith.constant 0 : index
    %c0_13 = arith.constant 0 : index
    %14 = vector.load %arg9[%c9, %c0_12, %c0_13] : memref<20x10x128xf32, #tpu.memory_space<vmem>>, vector<1x10x128xf32>
    tpu.vector_store %arg9[%c9, %c0_12, %c0_13], %11 {strides = array<i32>} : memref<20x10x128xf32, #tpu.memory_space<vmem>>, vector<1x10x128xf32>,
    %c1 = arith.constant 1 : index
    %c0_14 = arith.constant 0 : index
    %c0_15 = arith.constant 0 : index
    %15 = vector.load %arg9[%c1, %c0_14, %c0_15] : memref<20x10x128xf32, #tpu.memory_space<vmem>>, vector<8x1x128xf32>
    tpu.vector_store %arg9[%c1, %c0_14, %c0_15], %12 {strides = array<i32>} : memref<20x10x128xf32, #tpu.memory_space<vmem>>, vector<8x1x128xf32>,
    %c1_16 = arith.constant 1 : index
    %c9_17 = arith.constant 9 : index
    %c0_18 = arith.constant 0 : index
    %16 = vector.load %arg9[%c1_16, %c9_17, %c0_18] : memref<20x10x128xf32, #tpu.memory_space<vmem>>, vector<8x1x128xf32>
    tpu.vector_store %arg9[%c1_16, %c9_17, %c0_18], %12 {strides = array<i32>} : memref<20x10x128xf32, #tpu.memory_space<vmem>>, vector<8x1x128xf32>,
    %17 = vector.extract_strided_slice %10 {offsets = [0, 0, 0, 0], sizes = [1, 8, 8, 128], strides = [1, 1, 1, 1]} : vector<2x8x8x128xf32> to vector<1x8x8x128xf32>
    %18 = vector.shape_cast %17 : vector<1x8x8x128xf32> to vector<8x8x128xf32>
    %c1_19 = arith.constant 1 : index
    %c1_20 = arith.constant 1 : index
    %c0_21 = arith.constant 0 : index
    %19 = vector.load %arg9[%c1_19, %c1_20, %c0_21] : memref<20x10x128xf32, #tpu.memory_space<vmem>>, vector<8x8x128xf32>
    tpu.vector_store %arg9[%c1_19, %c1_20, %c0_21], %18 {strides = array<i32>} : memref<20x10x128xf32, #tpu.memory_space<vmem>>, vector<8x8x128xf32>,
    %c10 = arith.constant 10 : index
    %c0_22 = arith.constant 0 : index
    %c0_23 = arith.constant 0 : index
    %20 = vector.load %arg9[%c10, %c0_22, %c0_23] : memref<20x10x128xf32, #tpu.memory_space<vmem>>, vector<1x10x128xf32>
    tpu.vector_store %arg9[%c10, %c0_22, %c0_23], %11 {strides = array<i32>} : memref<20x10x128xf32, #tpu.memory_space<vmem>>, vector<1x10x128xf32>,
    %c19 = arith.constant 19 : index
    %c0_24 = arith.constant 0 : index
    %c0_25 = arith.constant 0 : index
    %21 = vector.load %arg9[%c19, %c0_24, %c0_25] : memref<20x10x128xf32, #tpu.memory_space<vmem>>, vector<1x10x128xf32>
    tpu.vector_store %arg9[%c19, %c0_24, %c0_25], %11 {strides = array<i32>} : memref<20x10x128xf32, #tpu.memory_space<vmem>>, vector<1x10x128xf32>,
    %c11 = arith.constant 11 : index
    %c0_26 = arith.constant 0 : index
    %c0_27 = arith.constant 0 : index
    %22 = vector.load %arg9[%c11, %c0_26, %c0_27] : memref<20x10x128xf32, #tpu.memory_space<vmem>>, vector<8x1x128xf32>
    tpu.vector_store %arg9[%c11, %c0_26, %c0_27], %12 {strides = array<i32>} : memref<20x10x128xf32, #tpu.memory_space<vmem>>, vector<8x1x128xf32>,
    %c11_28 = arith.constant 11 : index
    %c9_29 = arith.constant 9 : index
    %c0_30 = arith.constant 0 : index
    %23 = vector.load %arg9[%c11_28, %c9_29, %c0_30] : memref<20x10x128xf32, #tpu.memory_space<vmem>>, vector<8x1x128xf32>
    tpu.vector_store %arg9[%c11_28, %c9_29, %c0_30], %12 {strides = array<i32>} : memref<20x10x128xf32, #tpu.memory_space<vmem>>, vector<8x1x128xf32>,
    %24 = vector.extract_strided_slice %10 {offsets = [1, 0, 0, 0], sizes = [1, 8, 8, 128], strides = [1, 1, 1, 1]} : vector<2x8x8x128xf32> to vector<1x8x8x128xf32>
    %25 = vector.shape_cast %24 : vector<1x8x8x128xf32> to vector<8x8x128xf32>
    %c11_31 = arith.constant 11 : index
    %c1_32 = arith.constant 1 : index
    %c0_33 = arith.constant 0 : index
    %26 = vector.load %arg9[%c11_31, %c1_32, %c0_33] : memref<20x10x128xf32, #tpu.memory_space<vmem>>, vector<8x8x128xf32>
    tpu.vector_store %arg9[%c11_31, %c1_32, %c0_33], %25 {strides = array<i32>} : memref<20x10x128xf32, #tpu.memory_space<vmem>>, vector<8x8x128xf32>,
    %c0_34 = arith.constant 0 : index
    %c0_35 = arith.constant 0 : index
    %c0_36 = arith.constant 0 : index
    %27 = vector.load %arg9[%c0_34, %c0_35, %c0_36] : memref<20x10x128xf32, #tpu.memory_space<vmem>>, vector<8x8x128xf32>
    %28 = vector.shape_cast %27 : vector<8x8x128xf32> to vector<64x128xf32>
    %29 = arith.truncf %28 : vector<64x128xf32> to vector<64x128xbf16>
    %c0_37 = arith.constant 0 : index
    %c0_38 = arith.constant 0 : index
    %30 = vector.load %arg4[%c0_37, %c0_38] : memref<1152x128xbf16, #tpu.memory_space<vmem>>, vector<128x128xbf16>
    %cst_39 = arith.constant dense<0.000000e+00> : vector<64x128xf32>
    %31 = tpu.matmul %29, %30, %cst_39 {dimension_numbers = #tpu.dot_dimension_numbers<[1], [0], [0], [1], [0, 0, 1, 1], [], []>} : vector<64x128xbf16>, vector<128x128xbf16>, vector<64x128xf32> -> vector<64x128xf32>
    %c0_40 = arith.constant 0 : index
    %c0_41 = arith.constant 0 : index
    %32 = vector.load %arg10[%c0_40, %c0_41] : memref<128x128xf32, #tpu.memory_space<vmem>>, vector<64x128xf32>
    tpu.vector_store %arg10[%c0_40, %c0_41], %31 {strides = array<i32>} : memref<128x128xf32, #tpu.memory_space<vmem>>, vector<64x128xf32>,
    %c0_42 = arith.constant 0 : index
    %c1_43 = arith.constant 1 : index
    %c0_44 = arith.constant 0 : index
    %33 = vector.load %arg9[%c0_42, %c1_43, %c0_44] : memref<20x10x128xf32, #tpu.memory_space<vmem>>, vector<8x8x128xf32>
    %34 = vector.shape_cast %33 : vector<8x8x128xf32> to vector<64x128xf32>
    %35 = arith.truncf %34 : vector<64x128xf32> to vector<64x128xbf16>
    %c128 = arith.constant 128 : index
    %c0_45 = arith.constant 0 : index
    %36 = vector.load %arg4[%c128, %c0_45] : memref<1152x128xbf16, #tpu.memory_space<vmem>>, vector<128x128xbf16>
    %cst_46 = arith.constant dense<0.000000e+00> : vector<64x128xf32>
    %37 = tpu.matmul %35, %36, %cst_46 {dimension_numbers = #tpu.dot_dimension_numbers<[1], [0], [0], [1], [0, 0, 1, 1], [], []>} : vector<64x128xbf16>, vector<128x128xbf16>, vector<64x128xf32> -> vector<64x128xf32>
    %c0_47 = arith.constant 0 : index
    %c0_48 = arith.constant 0 : index
    %38 = vector.load %arg10[%c0_47, %c0_48] : memref<128x128xf32, #tpu.memory_space<vmem>>, vector<64x128xf32>
    %39 = arith.addf %38, %37 : vector<64x128xf32>
    %c0_49 = arith.constant 0 : index
    %c0_50 = arith.constant 0 : index
    %40 = vector.load %arg10[%c0_49, %c0_50] : memref<128x128xf32, #tpu.memory_space<vmem>>, vector<64x128xf32>
    tpu.vector_store %arg10[%c0_49, %c0_50], %39 {strides = array<i32>} : memref<128x128xf32, #tpu.memory_space<vmem>>, vector<64x128xf32>,
    %c0_51 = arith.constant 0 : index
    %c2 = arith.constant 2 : index
    %c0_52 = arith.constant 0 : index
    %41 = vector.load %arg9[%c0_51, %c2, %c0_52] : memref<20x10x128xf32, #tpu.memory_space<vmem>>, vector<8x8x128xf32>
    %42 = vector.shape_cast %41 : vector<8x8x128xf32> to vector<64x128xf32>
    %43 = arith.truncf %42 : vector<64x128xf32> to vector<64x128xbf16>
    %c256 = arith.constant 256 : index
    %c0_53 = arith.constant 0 : index
    %44 = vector.load %arg4[%c256, %c0_53] : memref<1152x128xbf16, #tpu.memory_space<vmem>>, vector<128x128xbf16>
    %cst_54 = arith.constant dense<0.000000e+00> : vector<64x128xf32>
    %45 = tpu.matmul %43, %44, %cst_54 {dimension_numbers = #tpu.dot_dimension_numbers<[1], [0], [0], [1], [0, 0, 1, 1], [], []>} : vector<64x128xbf16>, vector<128x128xbf16>, vector<64x128xf32> -> vector<64x128xf32>
    %c0_55 = arith.constant 0 : index
    %c0_56 = arith.constant 0 : index
    %46 = vector.load %arg10[%c0_55, %c0_56] : memref<128x128xf32, #tpu.memory_space<vmem>>, vector<64x128xf32>
    %47 = arith.addf %46, %45 : vector<64x128xf32>
    %c0_57 = arith.constant 0 : index
    %c0_58 = arith.constant 0 : index
    %48 = vector.load %arg10[%c0_57, %c0_58] : memref<128x128xf32, #tpu.memory_space<vmem>>, vector<64x128xf32>
    tpu.vector_store %arg10[%c0_57, %c0_58], %47 {strides = array<i32>} : memref<128x128xf32, #tpu.memory_space<vmem>>, vector<64x128xf32>,
    %c1_59 = arith.constant 1 : index
    %c0_60 = arith.constant 0 : index
    %c0_61 = arith.constant 0 : index
    %49 = vector.load %arg9[%c1_59, %c0_60, %c0_61] : memref<20x10x128xf32, #tpu.memory_space<vmem>>, vector<8x8x128xf32>
    %50 = vector.shape_cast %49 : vector<8x8x128xf32> to vector<64x128xf32>
    %51 = arith.truncf %50 : vector<64x128xf32> to vector<64x128xbf16>
    %c384 = arith.constant 384 : index
    %c0_62 = arith.constant 0 : index
    %52 = vector.load %arg4[%c384, %c0_62] : memref<1152x128xbf16, #tpu.memory_space<vmem>>, vector<128x128xbf16>
    %cst_63 = arith.constant dense<0.000000e+00> : vector<64x128xf32>
    %53 = tpu.matmul %51, %52, %cst_63 {dimension_numbers = #tpu.dot_dimension_numbers<[1], [0], [0], [1], [0, 0, 1, 1], [], []>} : vector<64x128xbf16>, vector<128x128xbf16>, vector<64x128xf32> -> vector<64x128xf32>
    %c0_64 = arith.constant 0 : index
    %c0_65 = arith.constant 0 : index
    %54 = vector.load %arg10[%c0_64, %c0_65] : memref<128x128xf32, #tpu.memory_space<vmem>>, vector<64x128xf32>
    %55 = arith.addf %54, %53 : vector<64x128xf32>
    %c0_66 = arith.constant 0 : index
    %c0_67 = arith.constant 0 : index
    %56 = vector.load %arg10[%c0_66, %c0_67] : memref<128x128xf32, #tpu.memory_space<vmem>>, vector<64x128xf32>
    tpu.vector_store %arg10[%c0_66, %c0_67], %55 {strides = array<i32>} : memref<128x128xf32, #tpu.memory_space<vmem>>, vector<64x128xf32>,
    %c1_68 = arith.constant 1 : index
    %c1_69 = arith.constant 1 : index
    %c0_70 = arith.constant 0 : index
    %57 = vector.load %arg9[%c1_68, %c1_69, %c0_70] : memref<20x10x128xf32, #tpu.memory_space<vmem>>, vector<8x8x128xf32>
    %58 = vector.shape_cast %57 : vector<8x8x128xf32> to vector<64x128xf32>
    %59 = arith.truncf %58 : vector<64x128xf32> to vector<64x128xbf16>
    %c512 = arith.constant 512 : index
    %c0_71 = arith.constant 0 : index
    %60 = vector.load %arg4[%c512, %c0_71] : memref<1152x128xbf16, #tpu.memory_space<vmem>>, vector<128x128xbf16>
    %cst_72 = arith.constant dense<0.000000e+00> : vector<64x128xf32>
    %61 = tpu.matmul %59, %60, %cst_72 {dimension_numbers = #tpu.dot_dimension_numbers<[1], [0], [0], [1], [0, 0, 1, 1], [], []>} : vector<64x128xbf16>, vector<128x128xbf16>, vector<64x128xf32> -> vector<64x128xf32>
    %c0_73 = arith.constant 0 : index
    %c0_74 = arith.constant 0 : index
    %62 = vector.load %arg10[%c0_73, %c0_74] : memref<128x128xf32, #tpu.memory_space<vmem>>, vector<64x128xf32>
    %63 = arith.addf %62, %61 : vector<64x128xf32>
    %c0_75 = arith.constant 0 : index
    %c0_76 = arith.constant 0 : index
    %64 = vector.load %arg10[%c0_75, %c0_76] : memref<128x128xf32, #tpu.memory_space<vmem>>, vector<64x128xf32>
    tpu.vector_store %arg10[%c0_75, %c0_76], %63 {strides = array<i32>} : memref<128x128xf32, #tpu.memory_space<vmem>>, vector<64x128xf32>,
    %c1_77 = arith.constant 1 : index
    %c2_78 = arith.constant 2 : index
    %c0_79 = arith.constant 0 : index
    %65 = vector.load %arg9[%c1_77, %c2_78, %c0_79] : memref<20x10x128xf32, #tpu.memory_space<vmem>>, vector<8x8x128xf32>
    %66 = vector.shape_cast %65 : vector<8x8x128xf32> to vector<64x128xf32>
    %67 = arith.truncf %66 : vector<64x128xf32> to vector<64x128xbf16>
    %c640 = arith.constant 640 : index
    %c0_80 = arith.constant 0 : index
    %68 = vector.load %arg4[%c640, %c0_80] : memref<1152x128xbf16, #tpu.memory_space<vmem>>, vector<128x128xbf16>
    %cst_81 = arith.constant dense<0.000000e+00> : vector<64x128xf32>
    %69 = tpu.matmul %67, %68, %cst_81 {dimension_numbers = #tpu.dot_dimension_numbers<[1], [0], [0], [1], [0, 0, 1, 1], [], []>} : vector<64x128xbf16>, vector<128x128xbf16>, vector<64x128xf32> -> vector<64x128xf32>
    %c0_82 = arith.constant 0 : index
    %c0_83 = arith.constant 0 : index
    %70 = vector.load %arg10[%c0_82, %c0_83] : memref<128x128xf32, #tpu.memory_space<vmem>>, vector<64x128xf32>
    %71 = arith.addf %70, %69 : vector<64x128xf32>
    %c0_84 = arith.constant 0 : index
    %c0_85 = arith.constant 0 : index
    %72 = vector.load %arg10[%c0_84, %c0_85] : memref<128x128xf32, #tpu.memory_space<vmem>>, vector<64x128xf32>
    tpu.vector_store %arg10[%c0_84, %c0_85], %71 {strides = array<i32>} : memref<128x128xf32, #tpu.memory_space<vmem>>, vector<64x128xf32>,
    %c2_86 = arith.constant 2 : index
    %c0_87 = arith.constant 0 : index
    %c0_88 = arith.constant 0 : index
    %73 = vector.load %arg9[%c2_86, %c0_87, %c0_88] : memref<20x10x128xf32, #tpu.memory_space<vmem>>, vector<8x8x128xf32>
    %74 = vector.shape_cast %73 : vector<8x8x128xf32> to vector<64x128xf32>
    %75 = arith.truncf %74 : vector<64x128xf32> to vector<64x128xbf16>
    %c768 = arith.constant 768 : index
    %c0_89 = arith.constant 0 : index
    %76 = vector.load %arg4[%c768, %c0_89] : memref<1152x128xbf16, #tpu.memory_space<vmem>>, vector<128x128xbf16>
    %cst_90 = arith.constant dense<0.000000e+00> : vector<64x128xf32>
    %77 = tpu.matmul %75, %76, %cst_90 {dimension_numbers = #tpu.dot_dimension_numbers<[1], [0], [0], [1], [0, 0, 1, 1], [], []>} : vector<64x128xbf16>, vector<128x128xbf16>, vector<64x128xf32> -> vector<64x128xf32>
    %c0_91 = arith.constant 0 : index
    %c0_92 = arith.constant 0 : index
    %78 = vector.load %arg10[%c0_91, %c0_92] : memref<128x128xf32, #tpu.memory_space<vmem>>, vector<64x128xf32>
    %79 = arith.addf %78, %77 : vector<64x128xf32>
    %c0_93 = arith.constant 0 : index
    %c0_94 = arith.constant 0 : index
    %80 = vector.load %arg10[%c0_93, %c0_94] : memref<128x128xf32, #tpu.memory_space<vmem>>, vector<64x128xf32>
    tpu.vector_store %arg10[%c0_93, %c0_94], %79 {strides = array<i32>} : memref<128x128xf32, #tpu.memory_space<vmem>>, vector<64x128xf32>,
    %c2_95 = arith.constant 2 : index
    %c1_96 = arith.constant 1 : index
    %c0_97 = arith.constant 0 : index
    %81 = vector.load %arg9[%c2_95, %c1_96, %c0_97] : memref<20x10x128xf32, #tpu.memory_space<vmem>>, vector<8x8x128xf32>
    %82 = vector.shape_cast %81 : vector<8x8x128xf32> to vector<64x128xf32>
    %83 = arith.truncf %82 : vector<64x128xf32> to vector<64x128xbf16>
    %c896 = arith.constant 896 : index
    %c0_98 = arith.constant 0 : index
    %84 = vector.load %arg4[%c896, %c0_98] : memref<1152x128xbf16, #tpu.memory_space<vmem>>, vector<128x128xbf16>
    %cst_99 = arith.constant dense<0.000000e+00> : vector<64x128xf32>
    %85 = tpu.matmul %83, %84, %cst_99 {dimension_numbers = #tpu.dot_dimension_numbers<[1], [0], [0], [1], [0, 0, 1, 1], [], []>} : vector<64x128xbf16>, vector<128x128xbf16>, vector<64x128xf32> -> vector<64x128xf32>
    %c0_100 = arith.constant 0 : index
    %c0_101 = arith.constant 0 : index
    %86 = vector.load %arg10[%c0_100, %c0_101] : memref<128x128xf32, #tpu.memory_space<vmem>>, vector<64x128xf32>
    %87 = arith.addf %86, %85 : vector<64x128xf32>
    %c0_102 = arith.constant 0 : index
    %c0_103 = arith.constant 0 : index
    %88 = vector.load %arg10[%c0_102, %c0_103] : memref<128x128xf32, #tpu.memory_space<vmem>>, vector<64x128xf32>
    tpu.vector_store %arg10[%c0_102, %c0_103], %87 {strides = array<i32>} : memref<128x128xf32, #tpu.memory_space<vmem>>, vector<64x128xf32>,
    %c2_104 = arith.constant 2 : index
    %c2_105 = arith.constant 2 : index
    %c0_106 = arith.constant 0 : index
    %89 = vector.load %arg9[%c2_104, %c2_105, %c0_106] : memref<20x10x128xf32, #tpu.memory_space<vmem>>, vector<8x8x128xf32>
    %90 = vector.shape_cast %89 : vector<8x8x128xf32> to vector<64x128xf32>
    %91 = arith.truncf %90 : vector<64x128xf32> to vector<64x128xbf16>
    %c1024 = arith.constant 1024 : index
    %c0_107 = arith.constant 0 : index
    %92 = vector.load %arg4[%c1024, %c0_107] : memref<1152x128xbf16, #tpu.memory_space<vmem>>, vector<128x128xbf16>
    %cst_108 = arith.constant dense<0.000000e+00> : vector<64x128xf32>
    %93 = tpu.matmul %91, %92, %cst_108 {dimension_numbers = #tpu.dot_dimension_numbers<[1], [0], [0], [1], [0, 0, 1, 1], [], []>} : vector<64x128xbf16>, vector<128x128xbf16>, vector<64x128xf32> -> vector<64x128xf32>
    %c0_109 = arith.constant 0 : index
    %c0_110 = arith.constant 0 : index
    %94 = vector.load %arg10[%c0_109, %c0_110] : memref<128x128xf32, #tpu.memory_space<vmem>>, vector<64x128xf32>
    %95 = arith.addf %94, %93 : vector<64x128xf32>
    %c0_111 = arith.constant 0 : index
    %c0_112 = arith.constant 0 : index
    %96 = vector.load %arg10[%c0_111, %c0_112] : memref<128x128xf32, #tpu.memory_space<vmem>>, vector<64x128xf32>
    tpu.vector_store %arg10[%c0_111, %c0_112], %95 {strides = array<i32>} : memref<128x128xf32, #tpu.memory_space<vmem>>, vector<64x128xf32>,
    %c10_113 = arith.constant 10 : index
    %c0_114 = arith.constant 0 : index
    %c0_115 = arith.constant 0 : index
    %97 = vector.load %arg9[%c10_113, %c0_114, %c0_115] : memref<20x10x128xf32, #tpu.memory_space<vmem>>, vector<8x8x128xf32>
    %98 = vector.shape_cast %97 : vector<8x8x128xf32> to vector<64x128xf32>
    %99 = arith.truncf %98 : vector<64x128xf32> to vector<64x128xbf16>
    %c0_116 = arith.constant 0 : index
    %c0_117 = arith.constant 0 : index
    %100 = vector.load %arg4[%c0_116, %c0_117] : memref<1152x128xbf16, #tpu.memory_space<vmem>>, vector<128x128xbf16>
    %cst_118 = arith.constant dense<0.000000e+00> : vector<64x128xf32>
    %101 = tpu.matmul %99, %100, %cst_118 {dimension_numbers = #tpu.dot_dimension_numbers<[1], [0], [0], [1], [0, 0, 1, 1], [], []>} : vector<64x128xbf16>, vector<128x128xbf16>, vector<64x128xf32> -> vector<64x128xf32>
    %c64 = arith.constant 64 : index
    %c0_119 = arith.constant 0 : index
    %102 = vector.load %arg10[%c64, %c0_119] : memref<128x128xf32, #tpu.memory_space<vmem>>, vector<64x128xf32>
    tpu.vector_store %arg10[%c64, %c0_119], %101 {strides = array<i32>} : memref<128x128xf32, #tpu.memory_space<vmem>>, vector<64x128xf32>,
    %c10_120 = arith.constant 10 : index
    %c1_121 = arith.constant 1 : index
    %c0_122 = arith.constant 0 : index
    %103 = vector.load %arg9[%c10_120, %c1_121, %c0_122] : memref<20x10x128xf32, #tpu.memory_space<vmem>>, vector<8x8x128xf32>
    %104 = vector.shape_cast %103 : vector<8x8x128xf32> to vector<64x128xf32>
    %105 = arith.truncf %104 : vector<64x128xf32> to vector<64x128xbf16>
    %c128_123 = arith.constant 128 : index
    %c0_124 = arith.constant 0 : index
    %106 = vector.load %arg4[%c128_123, %c0_124] : memref<1152x128xbf16, #tpu.memory_space<vmem>>, vector<128x128xbf16>
    %cst_125 = arith.constant dense<0.000000e+00> : vector<64x128xf32>
    %107 = tpu.matmul %105, %106, %cst_125 {dimension_numbers = #tpu.dot_dimension_numbers<[1], [0], [0], [1], [0, 0, 1, 1], [], []>} : vector<64x128xbf16>, vector<128x128xbf16>, vector<64x128xf32> -> vector<64x128xf32>
    %c64_126 = arith.constant 64 : index
    %c0_127 = arith.constant 0 : index
    %108 = vector.load %arg10[%c64_126, %c0_127] : memref<128x128xf32, #tpu.memory_space<vmem>>, vector<64x128xf32>
    %109 = arith.addf %108, %107 : vector<64x128xf32>
    %c64_128 = arith.constant 64 : index
    %c0_129 = arith.constant 0 : index
    %110 = vector.load %arg10[%c64_128, %c0_129] : memref<128x128xf32, #tpu.memory_space<vmem>>, vector<64x128xf32>
    tpu.vector_store %arg10[%c64_128, %c0_129], %109 {strides = array<i32>} : memref<128x128xf32, #tpu.memory_space<vmem>>, vector<64x128xf32>,
    %c10_130 = arith.constant 10 : index
    %c2_131 = arith.constant 2 : index
    %c0_132 = arith.constant 0 : index
    %111 = vector.load %arg9[%c10_130, %c2_131, %c0_132] : memref<20x10x128xf32, #tpu.memory_space<vmem>>, vector<8x8x128xf32>
    %112 = vector.shape_cast %111 : vector<8x8x128xf32> to vector<64x128xf32>
    %113 = arith.truncf %112 : vector<64x128xf32> to vector<64x128xbf16>
    %c256_133 = arith.constant 256 : index
    %c0_134 = arith.constant 0 : index
    %114 = vector.load %arg4[%c256_133, %c0_134] : memref<1152x128xbf16, #tpu.memory_space<vmem>>, vector<128x128xbf16>
    %cst_135 = arith.constant dense<0.000000e+00> : vector<64x128xf32>
    %115 = tpu.matmul %113, %114, %cst_135 {dimension_numbers = #tpu.dot_dimension_numbers<[1], [0], [0], [1], [0, 0, 1, 1], [], []>} : vector<64x128xbf16>, vector<128x128xbf16>, vector<64x128xf32> -> vector<64x128xf32>
    %c64_136 = arith.constant 64 : index
    %c0_137 = arith.constant 0 : index
    %116 = vector.load %arg10[%c64_136, %c0_137] : memref<128x128xf32, #tpu.memory_space<vmem>>, vector<64x128xf32>
    %117 = arith.addf %116, %115 : vector<64x128xf32>
    %c64_138 = arith.constant 64 : index
    %c0_139 = arith.constant 0 : index
    %118 = vector.load %arg10[%c64_138, %c0_139] : memref<128x128xf32, #tpu.memory_space<vmem>>, vector<64x128xf32>
    tpu.vector_store %arg10[%c64_138, %c0_139], %117 {strides = array<i32>} : memref<128x128xf32, #tpu.memory_space<vmem>>, vector<64x128xf32>,
    %c11_140 = arith.constant 11 : index
    %c0_141 = arith.constant 0 : index
    %c0_142 = arith.constant 0 : index
    %119 = vector.load %arg9[%c11_140, %c0_141, %c0_142] : memref<20x10x128xf32, #tpu.memory_space<vmem>>, vector<8x8x128xf32>
    %120 = vector.shape_cast %119 : vector<8x8x128xf32> to vector<64x128xf32>
    %121 = arith.truncf %120 : vector<64x128xf32> to vector<64x128xbf16>
    %c384_143 = arith.constant 384 : index
    %c0_144 = arith.constant 0 : index
    %122 = vector.load %arg4[%c384_143, %c0_144] : memref<1152x128xbf16, #tpu.memory_space<vmem>>, vector<128x128xbf16>
    %cst_145 = arith.constant dense<0.000000e+00> : vector<64x128xf32>
    %123 = tpu.matmul %121, %122, %cst_145 {dimension_numbers = #tpu.dot_dimension_numbers<[1], [0], [0], [1], [0, 0, 1, 1], [], []>} : vector<64x128xbf16>, vector<128x128xbf16>, vector<64x128xf32> -> vector<64x128xf32>
    %c64_146 = arith.constant 64 : index
    %c0_147 = arith.constant 0 : index
    %124 = vector.load %arg10[%c64_146, %c0_147] : memref<128x128xf32, #tpu.memory_space<vmem>>, vector<64x128xf32>
    %125 = arith.addf %124, %123 : vector<64x128xf32>
    %c64_148 = arith.constant 64 : index
    %c0_149 = arith.constant 0 : index
    %126 = vector.load %arg10[%c64_148, %c0_149] : memref<128x128xf32, #tpu.memory_space<vmem>>, vector<64x128xf32>
    tpu.vector_store %arg10[%c64_148, %c0_149], %125 {strides = array<i32>} : memref<128x128xf32, #tpu.memory_space<vmem>>, vector<64x128xf32>,
    %c11_150 = arith.constant 11 : index
    %c1_151 = arith.constant 1 : index
    %c0_152 = arith.constant 0 : index
    %127 = vector.load %arg9[%c11_150, %c1_151, %c0_152] : memref<20x10x128xf32, #tpu.memory_space<vmem>>, vector<8x8x128xf32>
    %128 = vector.shape_cast %127 : vector<8x8x128xf32> to vector<64x128xf32>
    %129 = arith.truncf %128 : vector<64x128xf32> to vector<64x128xbf16>
    %c512_153 = arith.constant 512 : index
    %c0_154 = arith.constant 0 : index
    %130 = vector.load %arg4[%c512_153, %c0_154] : memref<1152x128xbf16, #tpu.memory_space<vmem>>, vector<128x128xbf16>
    %cst_155 = arith.constant dense<0.000000e+00> : vector<64x128xf32>
    %131 = tpu.matmul %129, %130, %cst_155 {dimension_numbers = #tpu.dot_dimension_numbers<[1], [0], [0], [1], [0, 0, 1, 1], [], []>} : vector<64x128xbf16>, vector<128x128xbf16>, vector<64x128xf32> -> vector<64x128xf32>
    %c64_156 = arith.constant 64 : index
    %c0_157 = arith.constant 0 : index
    %132 = vector.load %arg10[%c64_156, %c0_157] : memref<128x128xf32, #tpu.memory_space<vmem>>, vector<64x128xf32>
    %133 = arith.addf %132, %131 : vector<64x128xf32>
    %c64_158 = arith.constant 64 : index
    %c0_159 = arith.constant 0 : index
    %134 = vector.load %arg10[%c64_158, %c0_159] : memref<128x128xf32, #tpu.memory_space<vmem>>, vector<64x128xf32>
    tpu.vector_store %arg10[%c64_158, %c0_159], %133 {strides = array<i32>} : memref<128x128xf32, #tpu.memory_space<vmem>>, vector<64x128xf32>,
    %c11_160 = arith.constant 11 : index
    %c2_161 = arith.constant 2 : index
    %c0_162 = arith.constant 0 : index
    %135 = vector.load %arg9[%c11_160, %c2_161, %c0_162] : memref<20x10x128xf32, #tpu.memory_space<vmem>>, vector<8x8x128xf32>
    %136 = vector.shape_cast %135 : vector<8x8x128xf32> to vector<64x128xf32>
    %137 = arith.truncf %136 : vector<64x128xf32> to vector<64x128xbf16>
    %c640_163 = arith.constant 640 : index
    %c0_164 = arith.constant 0 : index
    %138 = vector.load %arg4[%c640_163, %c0_164] : memref<1152x128xbf16, #tpu.memory_space<vmem>>, vector<128x128xbf16>
    %cst_165 = arith.constant dense<0.000000e+00> : vector<64x128xf32>
    %139 = tpu.matmul %137, %138, %cst_165 {dimension_numbers = #tpu.dot_dimension_numbers<[1], [0], [0], [1], [0, 0, 1, 1], [], []>} : vector<64x128xbf16>, vector<128x128xbf16>, vector<64x128xf32> -> vector<64x128xf32>
    %c64_166 = arith.constant 64 : index
    %c0_167 = arith.constant 0 : index
    %140 = vector.load %arg10[%c64_166, %c0_167] : memref<128x128xf32, #tpu.memory_space<vmem>>, vector<64x128xf32>
    %141 = arith.addf %140, %139 : vector<64x128xf32>
    %c64_168 = arith.constant 64 : index
    %c0_169 = arith.constant 0 : index
    %142 = vector.load %arg10[%c64_168, %c0_169] : memref<128x128xf32, #tpu.memory_space<vmem>>, vector<64x128xf32>
    tpu.vector_store %arg10[%c64_168, %c0_169], %141 {strides = array<i32>} : memref<128x128xf32, #tpu.memory_space<vmem>>, vector<64x128xf32>,
    %c12 = arith.constant 12 : index
    %c0_170 = arith.constant 0 : index
    %c0_171 = arith.constant 0 : index
    %143 = vector.load %arg9[%c12, %c0_170, %c0_171] : memref<20x10x128xf32, #tpu.memory_space<vmem>>, vector<8x8x128xf32>
    %144 = vector.shape_cast %143 : vector<8x8x128xf32> to vector<64x128xf32>
    %145 = arith.truncf %144 : vector<64x128xf32> to vector<64x128xbf16>
    %c768_172 = arith.constant 768 : index
    %c0_173 = arith.constant 0 : index
    %146 = vector.load %arg4[%c768_172, %c0_173] : memref<1152x128xbf16, #tpu.memory_space<vmem>>, vector<128x128xbf16>
    %cst_174 = arith.constant dense<0.000000e+00> : vector<64x128xf32>
    %147 = tpu.matmul %145, %146, %cst_174 {dimension_numbers = #tpu.dot_dimension_numbers<[1], [0], [0], [1], [0, 0, 1, 1], [], []>} : vector<64x128xbf16>, vector<128x128xbf16>, vector<64x128xf32> -> vector<64x128xf32>
    %c64_175 = arith.constant 64 : index
    %c0_176 = arith.constant 0 : index
    %148 = vector.load %arg10[%c64_175, %c0_176] : memref<128x128xf32, #tpu.memory_space<vmem>>, vector<64x128xf32>
    %149 = arith.addf %148, %147 : vector<64x128xf32>
    %c64_177 = arith.constant 64 : index
    %c0_178 = arith.constant 0 : index
    %150 = vector.load %arg10[%c64_177, %c0_178] : memref<128x128xf32, #tpu.memory_space<vmem>>, vector<64x128xf32>
    tpu.vector_store %arg10[%c64_177, %c0_178], %149 {strides = array<i32>} : memref<128x128xf32, #tpu.memory_space<vmem>>, vector<64x128xf32>,
    %c12_179 = arith.constant 12 : index
    %c1_180 = arith.constant 1 : index
    %c0_181 = arith.constant 0 : index
    %151 = vector.load %arg9[%c12_179, %c1_180, %c0_181] : memref<20x10x128xf32, #tpu.memory_space<vmem>>, vector<8x8x128xf32>
    %152 = vector.shape_cast %151 : vector<8x8x128xf32> to vector<64x128xf32>
    %153 = arith.truncf %152 : vector<64x128xf32> to vector<64x128xbf16>
    %c896_182 = arith.constant 896 : index
    %c0_183 = arith.constant 0 : index
    %154 = vector.load %arg4[%c896_182, %c0_183] : memref<1152x128xbf16, #tpu.memory_space<vmem>>, vector<128x128xbf16>
    %cst_184 = arith.constant dense<0.000000e+00> : vector<64x128xf32>
    %155 = tpu.matmul %153, %154, %cst_184 {dimension_numbers = #tpu.dot_dimension_numbers<[1], [0], [0], [1], [0, 0, 1, 1], [], []>} : vector<64x128xbf16>, vector<128x128xbf16>, vector<64x128xf32> -> vector<64x128xf32>
    %c64_185 = arith.constant 64 : index
    %c0_186 = arith.constant 0 : index
    %156 = vector.load %arg10[%c64_185, %c0_186] : memref<128x128xf32, #tpu.memory_space<vmem>>, vector<64x128xf32>
    %157 = arith.addf %156, %155 : vector<64x128xf32>
    %c64_187 = arith.constant 64 : index
    %c0_188 = arith.constant 0 : index
    %158 = vector.load %arg10[%c64_187, %c0_188] : memref<128x128xf32, #tpu.memory_space<vmem>>, vector<64x128xf32>
    tpu.vector_store %arg10[%c64_187, %c0_188], %157 {strides = array<i32>} : memref<128x128xf32, #tpu.memory_space<vmem>>, vector<64x128xf32>,
    %c12_189 = arith.constant 12 : index
    %c2_190 = arith.constant 2 : index
    %c0_191 = arith.constant 0 : index
    %159 = vector.load %arg9[%c12_189, %c2_190, %c0_191] : memref<20x10x128xf32, #tpu.memory_space<vmem>>, vector<8x8x128xf32>
    %160 = vector.shape_cast %159 : vector<8x8x128xf32> to vector<64x128xf32>
    %161 = arith.truncf %160 : vector<64x128xf32> to vector<64x128xbf16>
    %c1024_192 = arith.constant 1024 : index
    %c0_193 = arith.constant 0 : index
    %162 = vector.load %arg4[%c1024_192, %c0_193] : memref<1152x128xbf16, #tpu.memory_space<vmem>>, vector<128x128xbf16>
    %cst_194 = arith.constant dense<0.000000e+00> : vector<64x128xf32>
    %163 = tpu.matmul %161, %162, %cst_194 {dimension_numbers = #tpu.dot_dimension_numbers<[1], [0], [0], [1], [0, 0, 1, 1], [], []>} : vector<64x128xbf16>, vector<128x128xbf16>, vector<64x128xf32> -> vector<64x128xf32>
    %c64_195 = arith.constant 64 : index
    %c0_196 = arith.constant 0 : index
    %164 = vector.load %arg10[%c64_195, %c0_196] : memref<128x128xf32, #tpu.memory_space<vmem>>, vector<64x128xf32>
    %165 = arith.addf %164, %163 : vector<64x128xf32>
    %c64_197 = arith.constant 64 : index
    %c0_198 = arith.constant 0 : index
    %166 = vector.load %arg10[%c64_197, %c0_198] : memref<128x128xf32, #tpu.memory_space<vmem>>, vector<64x128xf32>
    tpu.vector_store %arg10[%c64_197, %c0_198], %165 {strides = array<i32>} : memref<128x128xf32, #tpu.memory_space<vmem>>, vector<64x128xf32>,
    %c0_199 = arith.constant 0 : index
    %c0_200 = arith.constant 0 : index
    %167 = vector.load %arg10[%c0_199, %c0_200] : memref<128x128xf32, #tpu.memory_space<vmem>>, vector<128x128xf32>
    %c0_201 = arith.constant 0 : index
    %c0_202 = arith.constant 0 : index
    %168 = vector.load %arg5[%c0_201, %c0_202] : memref<1x128xf32, #tpu.memory_space<vmem>>, vector<1x128xf32>
    %169 = vector.broadcast %168 : vector<1x128xf32> to vector<128x128xf32>
    %170 = arith.addf %167, %169 : vector<128x128xf32>
    %cst_203 = arith.constant 0.000000e+00 : f32
    %171 = vector.broadcast %cst_203 : f32 to vector<128x128xf32>
    %172 = arith.maximumf %170, %171 : vector<128x128xf32>
    %173 = arith.truncf %172 : vector<128x128xf32> to vector<128x128xbf16>
    %c0_204 = arith.constant 0 : index
    %c0_205 = arith.constant 0 : index
    %174 = vector.load %arg6[%c0_204, %c0_205] : memref<128x128xbf16, #tpu.memory_space<vmem>>, vector<128x128xbf16>
    %cst_206 = arith.constant dense<0.000000e+00> : vector<128x128xf32>
    %175 = tpu.matmul %173, %174, %cst_206 {dimension_numbers = #tpu.dot_dimension_numbers<[1], [0], [0], [1], [0, 0, 1, 1], [], []>} : vector<128x128xbf16>, vector<128x128xbf16>, vector<128x128xf32> -> vector<128x128xf32>
    %c0_207 = arith.constant 0 : index
    %c0_208 = arith.constant 0 : index
    %c0_209 = arith.constant 0 : index
    %176 = vector.load %arg1[%c0_207, %c0_208, %c0_209] : memref<2x64x128xf32, #tpu.memory_space<vmem>>, vector<2x64x128xf32>
    %177 = vector.shape_cast %176 : vector<2x64x128xf32> to vector<128x128xf32>
    %c0_210 = arith.constant 0 : index
    %c0_211 = arith.constant 0 : index
    %178 = vector.load %arg7[%c0_210, %c0_211] : memref<1x128xf32, #tpu.memory_space<vmem>>, vector<1x128xf32>
    %179 = vector.broadcast %178 : vector<1x128xf32> to vector<128x128xf32>
    %180 = arith.addf %175, %179 : vector<128x128xf32>
    %181 = arith.addf %180, %177 : vector<128x128xf32>
    %cst_212 = arith.constant 0.000000e+00 : f32
    %182 = vector.broadcast %cst_212 : f32 to vector<128x128xf32>
    %183 = arith.maximumf %181, %182 : vector<128x128xf32>
    %184 = vector.shape_cast %183 : vector<128x128xf32> to vector<2x64x128xf32>
    %c0_213 = arith.constant 0 : index
    %c0_214 = arith.constant 0 : index
    %c0_215 = arith.constant 0 : index
    %185 = vector.load %arg8[%c0_213, %c0_214, %c0_215] : memref<2x64x128xf32, #tpu.memory_space<vmem>>, vector<2x64x128xf32>
    tpu.vector_store %arg8[%c0_213, %c0_214, %c0_215], %184 {strides = array<i32>} : memref<2x64x128xf32, #tpu.memory_space<vmem>>, vector<2x64x128xf32>,
    return
  }
  func.func @transform_0(%arg0: i32) -> (i32, i32, i32) {
    %c0_i32 = arith.constant 0 : i32
    %c0_i32_0 = arith.constant 0 : i32
    %c0_i32_1 = arith.constant 0 : i32
    return %arg0, %c0_i32, %c0_i32_0 : i32, i32, i32
  }
  func.func @transform_1(%arg0: i32) -> (i32, i32) {
    %c0_i32 = arith.constant 0 : i32
    %c0_i32_0 = arith.constant 0 : i32
    %c0_i32_1 = arith.constant 0 : i32
    return %c0_i32, %c0_i32_0 : i32, i32
  }
  func.func @transform_2(%arg0: i32) -> (i32, i32) {
    %c0_i32 = arith.constant 0 : i32
    %c0_i32_0 = arith.constant 0 : i32
    %c0_i32_1 = arith.constant 0 : i32
    return %c0_i32, %c0_i32_0 : i32, i32
  }
  func.func @transform_3(%arg0: i32) -> (i32, i32) {
    %c0_i32 = arith.constant 0 : i32
    %c0_i32_0 = arith.constant 0 : i32
    %c0_i32_1 = arith.constant 0 : i32
    return %c0_i32, %c0_i32_0 : i32, i32
  }
  func.func @transform_4(%arg0: i32) -> (i32, i32) {
    %c0_i32 = arith.constant 0 : i32
    %c0_i32_0 = arith.constant 0 : i32
    %c0_i32_1 = arith.constant 0 : i32
    return %c0_i32, %c0_i32_0 : i32, i32
  }
  func.func @transform_5(%arg0: i32) -> (i32, i32) {
    %c0_i32 = arith.constant 0 : i32
    %c0_i32_0 = arith.constant 0 : i32
    %c0_i32_1 = arith.constant 0 : i32
    return %c0_i32, %c0_i32_0 : i32, i32
  }
  func.func @transform_6(%arg0: i32) -> (i32, i32) {
    %c0_i32 = arith.constant 0 : i32
    %c0_i32_0 = arith.constant 0 : i32
    %c0_i32_1 = arith.constant 0 : i32
    return %c0_i32, %c0_i32_0 : i32, i32
  }
  func.func @transform_7(%arg0: i32) -> (i32, i32, i32) {
    %c0_i32 = arith.constant 0 : i32
    %c0_i32_0 = arith.constant 0 : i32
    %c0_i32_1 = arith.constant 0 : i32
    return %arg0, %c0_i32, %c0_i32_0 : i32, i32, i32
  }
}

</mosaic_0001>

<bundles_post_ra>
// kernel: tpu_custom_call.1
= control target key start
LH: loop header
LB: loop body
LE: loop exit
PB: predicated region body
PF: predicated region fallthrough
CT: control target
= control target key end

     0   :  { %12 = vsyncpa [#allocation5], 0  ;;  %s5426_s0 = inlined_call_operand.hbm [shape: f32[2,64,128], index: 0, kind: input, shape index: {}]   ;;  %s5427_s1 = inlined_call_operand.hbm [shape: bf16[128,128], index: 1, kind: input, shape index: {}]   ;;  %s5428_s2 = inlined_call_operand.vmem [shape: f32[1,128], index: 2, kind: input, shape index: {}]   ;;  %s5429_s3 = inlined_call_operand.hbm [shape: bf16[1152,128], index: 3, kind: input, shape index: {}]   ;;  %s5430_s4 = inlined_call_operand.vmem [shape: f32[1,128], index: 4, kind: input, shape index: {}]   ;;  %s5431_s5 = inlined_call_operand.hbm [shape: bf16[128,128], index: 5, kind: input, shape index: {}]   ;;  %s5432_s6 = inlined_call_operand.vmem [shape: f32[1,128], index: 6, kind: input, shape index: {}]   ;;  %s5433_s7 = inlined_call_operand.hbm [shape: f32[2,64,128], index: 7, kind: output, shape index: {}]  }
   0x1   :  { %13 = vsyncpa [#allocation8], 0 }
   0x2   :  { %14 = vsyncpa [#allocation11], 0 }
   0x3   :  { %15 = vsyncpa [#allocation6], 0  ;;  %s4930_s24 = smov [#allocation7]   ;;  %s4812_s28 = scalar_lea.hbm %s5427_s1, 1024 }
   0x4   :  { %s33_s25 = sshll.u32 %s4930_s24, 4  ;;  %p4813_p0 = scmp.ne.s32.totalorder %s5427_s1, %s4812_s28  ;;  %s34_s25 = int_to_ptr.vmem [resolvable:$true] %s33_s25 }
   0x5   :  { %p4816_p1 = scmp.lt.u32.totalorder %s4812_s28, %s5427_s1 }
   0x7   :  { %p4818_p2 = pnand %p4816_p1, %p4813_p0 }
   0x9   :  { %4821 = shalt.err (!%p4818_p2)
}
   0xa   :  { %s4822_s10 = scalar_lea.vmem %s34_s25, 1024  ;;  %p4827_p4 = scmp.lt.s32.totalorder %s34_s25, %s34_s25 }
   0xb   :  { %p4823_p3 = scmp.ne.s32.totalorder %s34_s25, %s4822_s10  ;;  %p4828_p5 = scmp.lt.s32.totalorder %s4822_s10, %s4822_s10 }
   0xd   :  { %p4829_p6 = por %p4828_p5, %p4827_p4 }
   0xf   :  { %p4830_p7 = pnand %p4829_p6, %p4823_p3 }
  0x11   :  { %4833 = shalt.err (!%p4830_p7)
}
  0x12   :  { %s4931_s11 = smov 64   ;;  %s4932_s12 = smov 4  }
  0x13   :  { %39 = dma.hbm_to_vmem [thread:$0]  %s5427_s1, 1024, %s34_s25, [#allocation8], %s4931_s11, %s4931_s11, %s4932_s12  }
  0x14   :  { %s4933_s15 = smov [#allocation4]   ;;  %s4834_s19 = scalar_lea.hbm %s5426_s0, 2048 }
  0x15   :  { %s21_s16 = sshll.u32 %s4933_s15, 4  ;;  %p4835_p8 = scmp.ne.s32.totalorder %s5426_s0, %s4834_s19  ;;  %s22_s16 = int_to_ptr.vmem [resolvable:$true] %s21_s16 }
  0x16   :  { %p4838_p9 = scmp.lt.u32.totalorder %s4834_s19, %s5426_s0 }
  0x18   :  { %p4840_p10 = pnand %p4838_p9, %p4835_p8 }
  0x1a   :  { %4843 = shalt.err (!%p4840_p10)
}
  0x1b   :  { %s4844_s24 = scalar_lea.vmem %s22_s16, 2048  ;;  %p4849_p12 = scmp.lt.s32.totalorder %s22_s16, %s22_s16 }
  0x1c   :  { %p4845_p11 = scmp.ne.s32.totalorder %s22_s16, %s4844_s24  ;;  %p4850_p13 = scmp.lt.s32.totalorder %s4844_s24, %s4844_s24 }
  0x1e   :  { %p4851_p0 = por %p4850_p13, %p4849_p12 }
  0x20   :  { %p4852_p1 = pnand %p4851_p0, %p4845_p11 }
  0x22   :  { %4855 = shalt.err (!%p4852_p1)
}
  0x23   :  { %s4934_s1 = smov 128   ;;  %s4935_s25 = smov 8  }
  0x24   :  { %27 = dma.hbm_to_vmem [thread:$0]  %s5426_s0, 2048, %s22_s16, [#allocation5], %s4934_s1, %s4934_s1, %s4935_s25  }
  0x25   :  { %s4936_s28 = smov [#allocation9]   ;;  %s4937_s30 = smov [#allocation10]  }
  0x26   :  { %s47_s29 = sshll.u32 %s4936_s28, 4  ;;  %s61_s8 = sshll.u32 %s4937_s30, 4  ;;  %s48_s29 = int_to_ptr.vmem [resolvable:$true] %s47_s29  ;;  %s5010_s8 = int_to_ptr.vmem [resolvable:$true] %s61_s8 }
  0x27   :  { %s4856_s13 = scalar_lea.hbm %s5429_s3, 9216 }
  0x28   :  { %p4857_p2 = scmp.ne.s32.totalorder %s5429_s3, %s4856_s13  ;;  %p4860_p3 = scmp.lt.u32.totalorder %s4856_s13, %s5429_s3 }
  0x2a   :  { %p4862_p4 = pnand %p4860_p3, %p4857_p2 }
  0x2c   :  { %4865 = shalt.err (!%p4862_p4)
}
  0x2d   :  { %s4866_s0 = scalar_lea.vmem %s48_s29, 9216  ;;  %p4871_p6 = scmp.lt.s32.totalorder %s48_s29, %s48_s29 }
  0x2e   :  { %p4867_p5 = scmp.ne.s32.totalorder %s48_s29, %s4866_s0  ;;  %p4872_p7 = scmp.lt.s32.totalorder %s4866_s0, %s4866_s0 }
  0x30   :  { %p4873_p8 = por %p4872_p7, %p4871_p6 }
  0x32   :  { %p4874_p9 = pnand %p4873_p8, %p4867_p5 }
  0x34   :  { %4877 = shalt.err (!%p4874_p9)
}
  0x35   :  { %53 = dma.hbm_to_vmem [thread:$0]  %s5429_s3, 9216, %s48_s29, [#allocation8], %s4931_s11, %s4931_s11, %s4932_s12  }
  0x36   :  { %s4878_s22 = scalar_lea.hbm %s5431_s5, 1024 }
  0x37   :  { %p4879_p10 = scmp.ne.s32.totalorder %s5431_s5, %s4878_s22  ;;  %p4882_p11 = scmp.lt.u32.totalorder %s4878_s22, %s5431_s5 }
  0x39   :  { %p4884_p12 = pnand %p4882_p11, %p4879_p10 }
  0x3b   :  { %4887 = shalt.err (!%p4884_p12)
}
  0x3c   :  { %s4888_s28 = scalar_lea.vmem %s5010_s8, 1024  ;;  %p4893_p0 = scmp.lt.s32.totalorder %s5010_s8, %s5010_s8 }
  0x3d   :  { %p4889_p13 = scmp.ne.s32.totalorder %s5010_s8, %s4888_s28  ;;  %p4894_p1 = scmp.lt.s32.totalorder %s4888_s28, %s4888_s28 }
  0x3f   :  { %p4895_p2 = por %p4894_p1, %p4893_p0 }
  0x41   :  { %p4896_p3 = pnand %p4895_p2, %p4889_p13 }
  0x43   :  { %4899 = shalt.err (!%p4896_p3)
}
  0x44   :  { %67 = dma.hbm_to_vmem [thread:$0]  %s5431_s5, 1024, %s5010_s8, [#allocation11], %s4931_s11, %s4931_s11, %s4932_s12  }
  0x45   :  { %4922 = dma.done.wait [#allocation5], 2048  }
  0x46   :  { %4923 = vsyncadd [#allocation5], 4294965248 }
  0x47   :  { %4924 = dma.done.wait [#allocation8], 10240  }
  0x48   :  { %4925 = vsyncadd [#allocation8], 4294957056 }
  0x49   :  { %4926 = dma.done.wait [#allocation11], 1024  }
  0x4a   :  { %4927 = vsyncadd [#allocation11], 4294966272  ;;  %v4651_v0 = vld [vmem:[#allocation7] sm:$0xff]   ;;  %v4652_v1 = vld [vmem:[#allocation7 + $0x8] sm:$0xff]   ;;  %v4938_v36 = vmov 0.0  }
  0x4b   :  { %4017 = vmatprep.subr.bf16.mxu0 %v4651_v0  ;;  %v4653_v2 = vld [vmem:[#allocation7 + $0x10] sm:$0xff]   ;;  %v4654_v3 = vld [vmem:[#allocation7 + $0x18] sm:$0xff]   ;;  %v83_v4 = vld [vmem:[#allocation4] sm:$0xff]  ;;  %291 = vst [vmem:[#allocation2] sm:$0xff] %v4938_v36 }
  0x4c   :  { %4018 = vmatpush3.bf16.msra.mxu0 %v4651_v0  ;;  %v84_v5 = vld [vmem:[#allocation4 + $0x8] sm:$0xff]  ;;  %v4655_v7 = vld [vmem:[#allocation7 + $0x20] sm:$0xff]   ;;  %v4661_v11 = vld [vmem:[#allocation9 + $0x10] sm:$0xff]   ;;  %297 = vst [vmem:[#allocation2 + $0x10] sm:$0x1] %v4938_v36 }
  0x4d   :  { %4019 = vmatprep.subr.bf16.mxu0 %v4652_v1  ;;  %v99_v6 = vpack.c.bf16 %v84_v5, %v83_v4  ;;  %v4659_v8 = vld [vmem:[#allocation9] sm:$0xff]   ;;  %v4660_v9 = vld [vmem:[#allocation9 + $0x8] sm:$0xff]   ;;  %v4657_v12 = vld [vmem:[#allocation7 + $0x30] sm:$0xff]   ;;  %292 = vst [vmem:[#allocation2 + $0x8] sm:$0x3] %v4938_v36 }
  0x4e   :  { %v4656_v10 = vld [vmem:[#allocation7 + $0x28] sm:$0xff]   ;;  %4049 = vmatprep.subr.bf16.mxu1 %v4659_v8  ;;  %v4662_v13 = vld [vmem:[#allocation9 + $0x18] sm:$0xff]   ;;  %v85_v15 = vld [vmem:[#allocation4 + $0x10] sm:$0xff]  ;;  %294 = vst [vmem:[#allocation2 + $0x90] sm:$0xff] %v4938_v36 }
  0x4f   :  { %4033 = vmatprep.mubr.bf16.mxu0 %v99_v6  ;;  %4050 = vmatpush3.bf16.msra.mxu1 %v4659_v8  ;;  %v4658_v14 = vld [vmem:[#allocation7 + $0x38] sm:$0xff]   ;;  %v87_v17 = vld [vmem:[#allocation4 + $0x20] sm:$0xff]  ;;  %v88_v18 = vld [vmem:[#allocation4 + $0x28] sm:$0xff]  ;;  %295 = vst [vmem:[#allocation2 + $0x98] sm:$0x3] %v4938_v36 }
  0x50   :  { %4020 = vmatpush3.bf16.msra.mxu0 %v4652_v1  ;;  %4051 = vmatprep.subr.bf16.mxu1 %v4660_v9  ;;  %v86_v16 = vld [vmem:[#allocation4 + $0x18] sm:$0xff]  ;;  %v101_v20 = vpack.c.bf16 %v88_v18, %v87_v17  ;;  %v89_v21 = vld [vmem:[#allocation4 + $0x30] sm:$0xff]  ;;  %v91_v23 = vld [vmem:[#allocation4 + $0x40] sm:$0xff]  ;;  %298 = vst [vmem:[#allocation2 + $0x20] sm:$0x1] %v4938_v36 }
  0x51   :  { %4021 = vmatprep.subr.bf16.mxu0 %v4653_v2  ;;  %v100_v19 = vpack.c.bf16 %v86_v16, %v85_v15  ;;  %v90_v22 = vld [vmem:[#allocation4 + $0x38] sm:$0xff]  ;;  %v92_v24 = vld [vmem:[#allocation4 + $0x48] sm:$0xff]  ;;  %v93_v27 = vld [vmem:[#allocation4 + $0x50] sm:$0xff]  ;;  %299 = vst [vmem:[#allocation2 + $0x30] sm:$0x1] %v4938_v36 }
  0x52   :  { %v102_v25 = vpack.c.bf16 %v90_v22, %v89_v21  ;;  %v103_v26 = vpack.c.bf16 %v92_v24, %v91_v23  ;;  %v94_v28 = vld [vmem:[#allocation4 + $0x58] sm:$0xff]  ;;  %v95_v29 = vld [vmem:[#allocation4 + $0x60] sm:$0xff]  ;;  %v96_v30 = vld [vmem:[#allocation4 + $0x68] sm:$0xff]  ;;  %300 = vst [vmem:[#allocation2 + $0x40] sm:$0x1] %v4938_v36 }
  0x53   :  { %4052 = vmatpush3.bf16.msra.mxu1 %v4660_v9  ;;  %v104_v31 = vpack.c.bf16 %v94_v28, %v93_v27  ;;  %v105_v32 = vpack.c.bf16 %v96_v30, %v95_v29  ;;  %v97_v33 = vld [vmem:[#allocation4 + $0x70] sm:$0xff]  ;;  %v98_v34 = vld [vmem:[#allocation4 + $0x78] sm:$0xff]  ;;  %301 = vst [vmem:[#allocation2 + $0x50] sm:$0x1] %v4938_v36  ;;  %302 = vst [vmem:[#allocation2 + $0x60] sm:$0x1] %v4938_v36 }
  0x54   :  { %4022 = vmatpush3.bf16.msra.mxu0 %v4653_v2  ;;  %4053 = vmatprep.subr.bf16.mxu1 %v4661_v11  ;;  %v106_v35 = vpack.c.bf16 %v98_v34, %v97_v33  ;;  %303 = vst [vmem:[#allocation2 + $0x70] sm:$0x1] %v4938_v36  ;;  %304 = vst [vmem:[#allocation2 + $0x80] sm:$0x1] %v4938_v36  ;;  %v4663_v37 = vld [vmem:[#allocation9 + $0x20] sm:$0xff]   ;;  %v4665_v39 = vld [vmem:[#allocation9 + $0x28] sm:$0xff]  }
  0x55   :  { %4023 = vmatprep.subr.bf16.mxu0 %v4654_v3  ;;  %305 = vst [vmem:[#allocation2 + $0x19] sm:$0x1] %v4938_v36  ;;  %306 = vst [vmem:[#allocation2 + $0x29] sm:$0x1] %v4938_v36  ;;  %v4664_v38 = vld [vmem:[#allocation9] sm:$0xff]   ;;  %v4666_v40 = vld [vmem:[#allocation9 + $0x8] sm:$0xff]  }
  0x56   :  { %307 = vst [vmem:[#allocation2 + $0x39] sm:$0x1] %v4938_v36  ;;  %308 = vst [vmem:[#allocation2 + $0x49] sm:$0x1] %v4938_v36  ;;  %v4667_v41 = vld [vmem:[#allocation9 + $0x30] sm:$0xff]   ;;  %v4669_v43 = vld [vmem:[#allocation9 + $0x38] sm:$0xff]  }
  0x57   :  { %4054 = vmatpush3.bf16.msra.mxu1 %v4661_v11  ;;  %309 = vst [vmem:[#allocation2 + $0x59] sm:$0x1] %v4938_v36  ;;  %310 = vst [vmem:[#allocation2 + $0x69] sm:$0x1] %v4938_v36  ;;  %v4668_v42 = vld [vmem:[#allocation9 + $0x10] sm:$0xff]   ;;  %v4670_v44 = vld [vmem:[#allocation9 + $0x18] sm:$0xff]  }
  0x58   :  { %4024 = vmatpush3.bf16.msra.mxu0 %v4654_v3  ;;  %4055 = vmatprep.subr.bf16.mxu1 %v4662_v13  ;;  %311 = vst [vmem:[#allocation2 + $0x79] sm:$0x1] %v4938_v36  ;;  %312 = vst [vmem:[#allocation2 + $0x89] sm:$0x1] %v4938_v36  ;;  %v5087_v45 = vld [vmem:[#allocation9 + $0x40] sm:$0xff]   ;;  %v4674_v47 = vld [vmem:[#allocation9 + $0x28] sm:$0xff]  }
  0x59   :  { %4025 = vmatprep.subr.bf16.mxu0 %v4655_v7  ;;  %322 = vst [vmem:[#allocation2 + $0xa0] sm:$0xff] %v4938_v36  ;;  %323 = vst [vmem:[#allocation2 + $0xa8] sm:$0x3] %v4938_v36  ;;  %v4672_v46 = vld [vmem:[#allocation9 + $0x20] sm:$0xff]   ;;  %v4676_v48 = vld [vmem:[#allocation9 + $0x30] sm:$0xff]  }
  0x5a   :  { %325 = vst [vmem:[#allocation2 + $0x130] sm:$0xff] %v4938_v36  ;;  %326 = vst [vmem:[#allocation2 + $0x138] sm:$0x3] %v4938_v36  ;;  %v4678_v49 = vld [vmem:[#allocation9 + $0x38] sm:$0xff]   ;;  %v5090_v50 = vld [vmem:[#allocation9 + $0x40] sm:$0xff]  }
  0x5b   :  { %4056 = vmatpush3.bf16.msra.mxu1 %v4662_v13  ;;  %328 = vst [vmem:[#allocation2 + $0xb0] sm:$0x1] %v4938_v36  ;;  %329 = vst [vmem:[#allocation2 + $0xc0] sm:$0x1] %v4938_v36  ;;  %v5096_v51 = vld [vmem:[%s5428_s2] ss:$0 sm:$0xff] }
  0x5c   :  { %4026 = vmatpush3.bf16.msra.mxu0 %v4655_v7  ;;  %330 = vst [vmem:[#allocation2 + $0xd0] sm:$0x1] %v4938_v36  ;;  %331 = vst [vmem:[#allocation2 + $0xe0] sm:$0x1] %v4938_v36  ;;  %4057 = vmatprep.subr.bf16.mxu1 %v4663_v37  ;;  %v4689_v23 = vld [vmem:[#allocation9 + $0x88] sm:$0xff]  }
  0x5d   :  { %4027 = vmatprep.subr.bf16.mxu0 %v4656_v10  ;;  %332 = vst [vmem:[#allocation2 + $0xf0] sm:$0x1] %v4938_v36  ;;  %333 = vst [vmem:[#allocation2 + $0x100] sm:$0x1] %v4938_v36 }
  0x5e   :  { %334 = vst [vmem:[#allocation2 + $0x110] sm:$0x1] %v4938_v36  ;;  %335 = vst [vmem:[#allocation2 + $0x120] sm:$0x1] %v4938_v36 }
  0x5f   :  { %336 = vst [vmem:[#allocation2 + $0xb9] sm:$0x1] %v4938_v36  ;;  %337 = vst [vmem:[#allocation2 + $0xc9] sm:$0x1] %v4938_v36  ;;  %4058 = vmatpush3.bf16.msra.mxu1 %v4663_v37 }
  0x60   :  { %4028 = vmatpush3.bf16.msra.mxu0 %v4656_v10  ;;  %338 = vst [vmem:[#allocation2 + $0xd9] sm:$0x1] %v4938_v36  ;;  %339 = vst [vmem:[#allocation2 + $0xe9] sm:$0x1] %v4938_v36  ;;  %4059 = vmatprep.subr.bf16.mxu1 %v4665_v39 }
  0x61   :  { %4029 = vmatprep.subr.bf16.mxu0 %v4657_v12  ;;  %340 = vst [vmem:[#allocation2 + $0xf9] sm:$0x1] %v4938_v36  ;;  %341 = vst [vmem:[#allocation2 + $0x109] sm:$0x1] %v4938_v36 }
  0x62   :  { %342 = vst [vmem:[#allocation2 + $0x119] sm:$0x1] %v4938_v36  ;;  %343 = vst [vmem:[#allocation2 + $0x129] sm:$0x1] %v4938_v36 }
  0x63   :  { %4060 = vmatpush3.bf16.msra.mxu1 %v4665_v39 }
  0x64   :  { %4030 = vmatpush3.bf16.msra.mxu0 %v4657_v12  ;;  %4061 = vmatprep.subr.bf16.mxu1 %v4667_v41 }
  0x65   :  { %4031 = vmatprep.subr.bf16.mxu0 %v4658_v14 }
  0x67   :  { %4062 = vmatpush3.bf16.msra.mxu1 %v4667_v41  ;;  %v4675_v41 = vld [vmem:[#allocation9 + $0x50] sm:$0xff]  }
  0x68   :  { %4032 = vmatpush3.bf16.msra.mxu0 %v4658_v14  ;;  %4063 = vmatprep.subr.bf16.mxu1 %v4669_v43 }
  0x69   :  { %4265 = vmatprep.subr.bf16.mxu0 %v4664_v38 }
  0x6b   :  { %4034 = vmatmul.mubr.bf16.vlgmr.msra.gmra.mrb[0].mxu0 %v100_v19  ;;  %4064 = vmatpush3.bf16.msra.mxu1 %v4669_v43 }
  0x6c   :  { %4037 = vmatprep.mubr.bf16.mxu0 %v101_v20  ;;  %4266 = vmatpush3.bf16.msra.mxu0 %v4664_v38 }
  0x6d   :  { %4267 = vmatprep.subr.bf16.mxu0 %v4666_v40  ;;  %4073 = vmatprep.subr.bf16.mxu1 %v5087_v45 }
  0x70   :  { %4268 = vmatpush3.bf16.msra.mxu0 %v4666_v40 }
  0x71   :  { %4269 = vmatprep.subr.bf16.mxu0 %v4668_v42 }
  0x73   :  { %4038 = vmatmul.mubr.bf16.gmra.mrb[4].mxu0 %v102_v25 }
  0x74   :  { %4041 = vmatprep.mubr.bf16.mxu0 %v103_v26  ;;  %4270 = vmatpush3.bf16.msra.mxu0 %v4668_v42  ;;  %v4673_v26 = vld [vmem:[#allocation9 + $0x48] sm:$0xff]  }
  0x75   :  { %4271 = vmatprep.subr.bf16.mxu0 %v4670_v44 }
  0x78   :  { %4272 = vmatpush3.bf16.msra.mxu0 %v4670_v44 }
  0x79   :  { %4273 = vmatprep.subr.bf16.mxu0 %v4672_v46 }
  0x7b   :  { %4042 = vmatmul.mubr.bf16.gmra.mrb[8].mxu0 %v104_v31 }
  0x7c   :  { %4045 = vmatprep.mubr.bf16.mxu0 %v105_v32  ;;  %4274 = vmatpush3.bf16.msra.mxu0 %v4672_v46 }
  0x7d   :  { %4275 = vmatprep.subr.bf16.mxu0 %v4674_v47 }
  0x80   :  { %4276 = vmatpush3.bf16.msra.mxu0 %v4674_v47  ;;  %v501_v47 = vld [vmem:[#allocation2 + $0x1] sm:$0xff] }
  0x81   :  { %4277 = vmatprep.subr.bf16.mxu0 %v4676_v48 }
  0x83   :  { %4046 = vmatmul.mubr.bf16.gmra.mrb[12].mxu0 %v106_v35 }
  0x84   :  { %4278 = vmatpush3.bf16.msra.mxu0 %v4676_v48 }
  0x85   :  { %4279 = vmatprep.subr.bf16.mxu0 %v4678_v49 }
  0x88   :  { %4280 = vmatpush3.bf16.msra.mxu0 %v4678_v49 }
  0x89   :  { %4289 = vmatprep.subr.bf16.mxu0 %v5090_v50 }
 0x13e   :  { %v4035_v52 = vpop.f32.mrb[0].mxu0 }
 0x13f   :  { %v221_v53 = vadd.f32 %v4035_v52, %v5096_v51  ;;  %v212_v54 = vpop.f32.mrb[1].mxu0 }
 0x140   :  { %v5100_v55 = vadd.f32 %v5096_v51, %v212_v54  ;;  %v4036_v56 = vpop.f32.mrb[2].mxu0 }
 0x141   :  { %v277_v57 = vmax.f32 %v221_v53, 0.0  ;;  %v224_v58 = vadd.f32 %v4036_v56, %v5096_v51  ;;  %v215_v59 = vpop.f32.mrb[3].mxu0 }
 0x142   :  { %v275_v60 = vmax.f32 %v5100_v55, 0.0  ;;  %v216_v61 = vadd.f32 %v5096_v51, %v215_v59 }
 0x143   :  { %315 = vst [vmem:[#allocation2 + $0x31] sm:$0xff] %v277_v57  ;;  %v278_v62 = vmax.f32 %v224_v58, 0.0  ;;  %v4677_v58 = vld [vmem:[#allocation9 + $0x58] sm:$0xff]  }
 0x144   :  { %313 = vst [vmem:[#allocation2 + $0x11] sm:$0xff] %v275_v60  ;;  %v5107_v63 = vmax.f32 %v216_v61, 0.0 }
 0x145   :  { %316 = vst [vmem:[#allocation2 + $0x41] sm:$0xff] %v278_v62 }
 0x146   :  { %314 = vst [vmem:[#allocation2 + $0x21] sm:$0xff] %v5107_v63  ;;  %v4039_v0 = vpop.f32.mrb[4].mxu0  ;;  %v5111_v1 = vpack.c.bf16 %v277_v57, %v5107_v63 }
 0x147   :  { %v237_v2 = vadd.f32 %v4039_v0, %v5096_v51  ;;  %v228_v3 = vpop.f32.mrb[5].mxu0  ;;  %v509_v0 = vpack.c.bf16 %v275_v60, %v501_v47  ;;  %v4682_v47 = vld [vmem:[#allocation9 + $0x48] sm:$0xff]  }
 0x148   :  { %v229_v4 = vadd.f32 %v5096_v51, %v228_v3  ;;  %v4040_v5 = vpop.f32.mrb[6].mxu0 }
 0x149   :  { %v281_v6 = vmax.f32 %v237_v2, 0.0  ;;  %v240_v7 = vadd.f32 %v4040_v5, %v5096_v51  ;;  %v231_v8 = vpop.f32.mrb[7].mxu0 }
 0x14a   :  { %v279_v9 = vmax.f32 %v229_v4, 0.0  ;;  %v232_v10 = vadd.f32 %v5096_v51, %v231_v8  ;;  %v5119_v13 = vld [vmem:[#allocation2 + $0x30] sm:$0xff]  ;;  %v4688_v8 = vld [vmem:[#allocation9 + $0x60] sm:$0xff]  }
 0x14b   :  { %319 = vst [vmem:[#allocation2 + $0x71] sm:$0xff] %v281_v6  ;;  %v282_v11 = vmax.f32 %v240_v7, 0.0  ;;  %v5117_v12 = vld [vmem:[#allocation2 + $0x10] sm:$0xff] }
 0x14c   :  { %317 = vst [vmem:[#allocation2 + $0x51] sm:$0xff] %v279_v9  ;;  %v280_v14 = vmax.f32 %v232_v10, 0.0  ;;  %v360_v15 = vpack.c.bf16 %v5117_v12, %v4938_v36  ;;  %v5123_v16 = vld [vmem:[#allocation2 + $0x40] sm:$0xff]  ;;  %v5125_v17 = vpack.c.bf16 %v279_v9, %v278_v62  ;;  %v5127_v18 = vld [vmem:[#allocation2 + $0x32] sm:$0xff] }
 0x14d   :  { %v5129_v19 = vld [vmem:[#allocation2 + $0x42] sm:$0xff]  ;;  %320 = vst [vmem:[#allocation2 + $0x81] sm:$0xff] %v282_v11  ;;  %v840_v22 = vpack.c.bf16 %v5123_v16, %v5119_v13  ;;  %v5143_v28 = vld [vmem:[#allocation2 + $0x12] sm:$0xff] }
 0x14e   :  { %v5131_v20 = vld [vmem:[#allocation2 + $0x20] sm:$0xff]  ;;  %318 = vst [vmem:[#allocation2 + $0x61] sm:$0xff] %v280_v14  ;;  %v4043_v24 = vpop.f32.mrb[8].mxu0  ;;  %4065 = vmatprep.mubr.bf16.mxu1 %v360_v15  ;;  %v5141_v27 = vpack.c.bf16 %v281_v6, %v280_v14 }
 0x14f   :  { %v5133_v21 = vld [vmem:[#allocation2 + $0x22] sm:$0xff]  ;;  %v361_v25 = vpack.c.bf16 %v5119_v13, %v5131_v20  ;;  %v839_v29 = vpack.c.bf16 %v5131_v20, %v5117_v12  ;;  %v253_v30 = vadd.f32 %v4043_v24, %v5096_v51  ;;  %v244_v31 = vpop.f32.mrb[9].mxu0  ;;  %v4715_v12 = vld [vmem:[#allocation9 + $0xf0] sm:$0xff]   ;;  %v4725_v13 = vld [vmem:[#allocation9 + $0x118] sm:$0xff]  }
 0x150   :  { %v1169_v32 = vpack.c.bf16 %v5133_v21, %v5143_v28  ;;  %v245_v33 = vadd.f32 %v5096_v51, %v244_v31  ;;  %v4044_v34 = vpop.f32.mrb[10].mxu0  ;;  %v5165_v48 = vld [vmem:[#allocation2 + $0x41] sm:$0xff]  ;;  %v4716_v20 = vld [vmem:[#allocation9 + $0xd0] sm:$0xff]  }
 0x151   :  { %4066 = vmatmul.mubr.bf16.vlgmr.msra.gmra.mrb[0].mxu1 %v361_v25  ;;  %v285_v35 = vmax.f32 %v253_v30, 0.0  ;;  %v256_v37 = vadd.f32 %v4044_v34, %v5096_v51  ;;  %v247_v38 = vpop.f32.mrb[11].mxu0  ;;  %v4679_v15 = vld [vmem:[#allocation9 + $0x60] sm:$0xff]  }
 0x152   :  { %4074 = vmatpush3.bf16.msra.mxu1 %v5087_v45  ;;  %v5153_v39 = vmax.f32 %v245_v33, 0.0  ;;  %v248_v40 = vadd.f32 %v5096_v51, %v247_v38  ;;  %v5169_v52 = vld [vmem:[#allocation2 + $0x70] sm:$0xff] }
 0x153   :  { %4075 = vmatprep.subr.bf16.mxu1 %v4673_v26  ;;  %346 = vst [vmem:[#allocation2 + $0xd1] sm:$0xff] %v285_v35  ;;  %v286_v42 = vmax.f32 %v256_v37, 0.0  ;;  %v5156_v43 = vld [vmem:[#allocation2 + $0x50] sm:$0xff] }
 0x154   :  { %v5158_v44 = vld [vmem:[#allocation2 + $0x51] sm:$0xff]  ;;  %344 = vst [vmem:[#allocation2 + $0xb1] sm:$0xff] %v5153_v39  ;;  %v5161_v46 = vmax.f32 %v248_v40, 0.0  ;;  %v362_v45 = vpack.c.bf16 %v5156_v43, %v5123_v16 }
 0x155   :  { %347 = vst [vmem:[#allocation2 + $0xe1] sm:$0xff] %v286_v42  ;;  %v5167_v49 = vld [vmem:[#allocation2 + $0x60] sm:$0xff]  ;;  %v5184_v2 = vld [vmem:[#allocation2 + $0x52] sm:$0xff] }
 0x156   :  { %4076 = vmatpush3.bf16.msra.mxu1 %v4673_v26  ;;  %v5171_v53 = vld [vmem:[#allocation2 + $0x62] sm:$0xff]  ;;  %345 = vst [vmem:[#allocation2 + $0xc1] sm:$0xff] %v5161_v46  ;;  %v4047_v56 = vpop.f32.mrb[12].mxu0  ;;  %4069 = vmatprep.mubr.bf16.mxu1 %v362_v45  ;;  %v363_v57 = vpack.c.bf16 %v5169_v52, %v5167_v49  ;;  %v5179_v59 = vpack.c.bf16 %v285_v35, %v5161_v46  ;;  %v5198_v10 = vld [vmem:[#allocation2 + $0x71] sm:$0xff] }
 0x157   :  { %4077 = vmatprep.subr.bf16.mxu1 %v4675_v41  ;;  %v269_v61 = vadd.f32 %v4047_v56, %v5096_v51  ;;  %v260_v62 = vpop.f32.mrb[13].mxu0  ;;  %v841_v3 = vpack.c.bf16 %v5167_v49, %v5156_v43  ;;  %v2474_v4 = vpack.c.bf16 %v5161_v46, %v5153_v39  ;;  %v5190_v5 = vld [vmem:[#allocation2 + $0x61] sm:$0xff] }
 0x158   :  { %v261_v6 = vadd.f32 %v5096_v51, %v260_v62  ;;  %v4048_v7 = vpop.f32.mrb[14].mxu0  ;;  %v4681_v45 = vld [vmem:[#allocation9 + $0x68] sm:$0xff]   ;;  %v4727_v43 = vld [vmem:[#allocation9 + $0x120] sm:$0xff]  }
 0x159   :  { %4070 = vmatmul.mubr.bf16.gmra.mrb[4].mxu1 %v363_v57  ;;  %v289_v9 = vmax.f32 %v269_v61, 0.0  ;;  %v5196_v55 = vadd.f32 %v4048_v7, %v5096_v51  ;;  %v263_v60 = vpop.f32.mrb[15].mxu0  ;;  %v4684_v7 = vld [vmem:[#allocation9 + $0x50] sm:$0xff]   ;;  %v4690_v62 = vld [vmem:[#allocation9 + $0x68] sm:$0xff]   ;;  %v4728_v49 = vld [vmem:[#allocation9 + $0x100] sm:$0xff]  }
 0x15a   :  { %4078 = vmatpush3.bf16.msra.mxu1 %v4675_v41  ;;  %4089 = vmatprep.mubr.bf16.mxu1 %v509_v0  ;;  %v5200_v11 = vmax.f32 %v261_v6, 0.0  ;;  %v264_v14 = vadd.f32 %v5096_v51, %v263_v60  ;;  %v5208_v30 = vld [vmem:[#allocation2 + $0xd0] sm:$0xff]  ;;  %v4686_v41 = vld [vmem:[#allocation9 + $0x58] sm:$0xff]   ;;  %v5328_v46 = vld [vmem:[#allocation2 + $0x81] sm:$0xff] }
 0x15b   :  { %4079 = vmatprep.subr.bf16.mxu1 %v4677_v58  ;;  %350 = vst [vmem:[#allocation2 + $0x111] sm:$0xff] %v289_v9  ;;  %v290_v25 = vmax.f32 %v5196_v55, 0.0  ;;  %v5206_v26 = vld [vmem:[#allocation2 + $0xb0] sm:$0xff]  ;;  %v4754_v55 = vld [vmem:[#allocation9 + $0x168] sm:$0xff]  }
 0x15c   :  { %348 = vst [vmem:[#allocation2 + $0xf1] sm:$0xff] %v5200_v11  ;;  %v5211_v31 = vmax.f32 %v264_v14, 0.0  ;;  %v1830_v33 = vpack.c.bf16 %v5206_v26, %v4938_v36  ;;  %v5215_v51 = vld [vmem:[#allocation2 + $0xe0] sm:$0xff]  ;;  %v5218_v34 = vpack.c.bf16 %v5200_v11, %v286_v42  ;;  %v5220_v35 = vld [vmem:[#allocation2 + $0xd2] sm:$0xff] }
 0x15d   :  { %v5222_v37 = vld [vmem:[#allocation2 + $0xe2] sm:$0xff]  ;;  %351 = vst [vmem:[#allocation2 + $0x121] sm:$0xff] %v290_v25  ;;  %v2310_v36 = vpack.c.bf16 %v5215_v51, %v5208_v30  ;;  %v5240_v57 = vld [vmem:[#allocation2 + $0xb2] sm:$0xff] }
 0x15e   :  { %4080 = vmatpush3.bf16.msra.mxu1 %v4677_v58  ;;  %v5226_v38 = vld [vmem:[#allocation2 + $0xc0] sm:$0xff]  ;;  %349 = vst [vmem:[#allocation2 + $0x101] sm:$0xff] %v5211_v31  ;;  %4281 = vmatprep.mubr.bf16.mxu0 %v1830_v33  ;;  %v5238_v56 = vpack.c.bf16 %v289_v9, %v5211_v31  ;;  %v2476_v61 = vpack.c.bf16 %v5211_v31, %v5200_v11  ;;  %v4683_v0 = vld [vmem:[#allocation9 + $0x70] sm:$0xff]  }
 0x15f   :  { %v5228_v40 = vld [vmem:[#allocation2 + $0xc2] sm:$0xff]  ;;  %4081 = vmatprep.subr.bf16.mxu1 %v4679_v15  ;;  %v1831_v42 = vpack.c.bf16 %v5208_v30, %v5226_v38  ;;  %v2309_v58 = vpack.c.bf16 %v5226_v38, %v5206_v26  ;;  %v4723_v26 = vld [vmem:[#allocation9 + $0x110] sm:$0xff]   ;;  %v4733_v30 = vld [vmem:[#allocation9 + $0x138] sm:$0xff]  }
 0x160   :  { %v1971_v33 = vld [vmem:[#allocation2 + $0xa1] sm:$0xff]  ;;  %v5434_v11 = vpack.c.bf16 %v5228_v40, %v5240_v57 }
 0x161   :  { %4282 = vmatmul.mubr.bf16.vlgmr.msra.gmra.mrb[16].mxu0 %v1831_v42  ;;  %v5304_v38 = vld [vmem:[#allocation2 + $0x80] sm:$0xff] }
 0x162   :  { %4082 = vmatpush3.bf16.msra.mxu1 %v4679_v15  ;;  %4290 = vmatpush3.bf16.msra.mxu0 %v5090_v50  ;;  %v5251_v9 = vld [vmem:[#allocation2 + $0x110] sm:$0xff]  ;;  %v4685_v15 = vld [vmem:[#allocation9 + $0x78] sm:$0xff]   ;;  %v4751_v31 = vld [vmem:[#allocation9 + $0x180] sm:$0xff]  }
 0x163   :  { %4083 = vmatprep.subr.bf16.mxu1 %v4681_v45  ;;  %4291 = vmatprep.subr.bf16.mxu0 %v4682_v47  ;;  %v5249_v6 = vld [vmem:[#allocation2 + $0xf0] sm:$0xff] }
 0x164   :  { %v1832_v60 = vpack.c.bf16 %v5249_v6, %v5215_v51  ;;  %v5261_v24 = vld [vmem:[#allocation2 + $0xf2] sm:$0xff] }
 0x165   :  { %v5255_v14 = vld [vmem:[#allocation2 + $0x100] sm:$0xff]  ;;  %v4734_v51 = vld [vmem:[#allocation9 + $0x118] sm:$0xff]  }
 0x166   :  { %4084 = vmatpush3.bf16.msra.mxu1 %v4681_v45  ;;  %4292 = vmatpush3.bf16.msra.mxu0 %v4682_v47  ;;  %v5257_v42 = vld [vmem:[#allocation2 + $0x102] sm:$0xff]  ;;  %v1833_v50 = vpack.c.bf16 %v5251_v9, %v5255_v14  ;;  %v2311_v54 = vpack.c.bf16 %v5255_v14, %v5249_v6  ;;  %v1979_v47 = vpack.c.bf16 %v5153_v39, %v1971_v33  ;;  %v5322_v6 = vld [vmem:[#allocation2 + $0x31] sm:$0xff] }
 0x167   :  { %4285 = vmatprep.mubr.bf16.mxu0 %v1832_v60  ;;  %4085 = vmatprep.subr.bf16.mxu1 %v4683_v0  ;;  %v2641_v45 = vpack.c.bf16 %v5257_v42, %v5261_v24  ;;  %v4687_v60 = vld [vmem:[#allocation9 + $0x80] sm:$0xff]   ;;  %v4737_v14 = vld [vmem:[#allocation9 + $0x148] sm:$0xff]   ;;  %v4739_v39 = vld [vmem:[#allocation9 + $0x150] sm:$0xff]  }
 0x168   :  { %4293 = vmatprep.subr.bf16.mxu0 %v4684_v7  ;;  %v666_v33 = vld [vmem:[#allocation2 + $0x2] sm:$0xff] }
 0x169   :  { %4286 = vmatmul.mubr.bf16.gmra.mrb[20].mxu0 %v1833_v50  ;;  %v4693_v50 = vld [vmem:[#allocation9 + $0x98] sm:$0xff]  }
 0x16a   :  { %4086 = vmatpush3.bf16.msra.mxu1 %v4683_v0  ;;  %4294 = vmatpush3.bf16.msra.mxu0 %v4684_v7  ;;  %v4691_v0 = vld [vmem:[#allocation9 + $0x90] sm:$0xff]  }
 0x16b   :  { %4305 = vmatprep.mubr.bf16.mxu0 %v1979_v47  ;;  %4087 = vmatprep.subr.bf16.mxu1 %v4685_v15  ;;  %v4692_v7 = vld [vmem:[#allocation9 + $0x70] sm:$0xff]   ;;  %v2136_v47 = vld [vmem:[#allocation2 + $0xa2] sm:$0xff] }
 0x16c   :  { %4295 = vmatprep.subr.bf16.mxu0 %v4686_v41 }
 0x16e   :  { %4088 = vmatpush3.bf16.msra.mxu1 %v4685_v15  ;;  %4296 = vmatpush3.bf16.msra.mxu0 %v4686_v41  ;;  %v674_v41 = vpack.c.bf16 %v5143_v28, %v666_v33  ;;  %v4694_v15 = vld [vmem:[#allocation9 + $0x78] sm:$0xff]   ;;  %v675_v33 = vpack.c.bf16 %v5127_v18, %v5133_v21  ;;  %v4747_v21 = vld [vmem:[#allocation9 + $0x170] sm:$0xff]  }
 0x16f   :  { %4097 = vmatprep.subr.bf16.mxu1 %v4687_v60  ;;  %4297 = vmatprep.subr.bf16.mxu0 %v4688_v8  ;;  %v4748_v28 = vld [vmem:[#allocation9 + $0x150] sm:$0xff]  }
 0x171   :  { %4090 = vmatmul.mubr.bf16.vlgmr.msra.gmra.mrb[0].mxu1 %v5111_v1  ;;  %v4695_v1 = vld [vmem:[#allocation9 + $0xa0] sm:$0xff]  }
 0x172   :  { %4093 = vmatprep.mubr.bf16.mxu1 %v5125_v17  ;;  %4098 = vmatpush3.bf16.msra.mxu1 %v4687_v60  ;;  %v4696_v17 = vld [vmem:[#allocation9 + $0x80] sm:$0xff]   ;;  %v4701_v60 = vld [vmem:[#allocation9 + $0xb8] sm:$0xff]  }
 0x173   :  { %4298 = vmatpush3.bf16.msra.mxu0 %v4688_v8  ;;  %4099 = vmatprep.subr.bf16.mxu1 %v4689_v23  ;;  %v4698_v8 = vld [vmem:[#allocation9 + $0x88] sm:$0xff]  }
 0x174   :  { %4299 = vmatprep.subr.bf16.mxu0 %v4690_v62 }
 0x176   :  { %4100 = vmatpush3.bf16.msra.mxu1 %v4689_v23  ;;  %v4697_v23 = vld [vmem:[#allocation9 + $0xa8] sm:$0xff]  }
 0x177   :  { %4300 = vmatpush3.bf16.msra.mxu0 %v4690_v62  ;;  %4101 = vmatprep.subr.bf16.mxu1 %v4691_v0  ;;  %v4700_v62 = vld [vmem:[#allocation9 + $0x90] sm:$0xff]  }
 0x178   :  { %4301 = vmatprep.subr.bf16.mxu0 %v4692_v7 }
 0x179   :  { %4094 = vmatmul.mubr.bf16.gmra.mrb[4].mxu1 %v5141_v27  ;;  %v4699_v27 = vld [vmem:[#allocation9 + $0xb0] sm:$0xff]  }
 0x17a   :  { %4102 = vmatpush3.bf16.msra.mxu1 %v4691_v0  ;;  %4113 = vmatprep.mubr.bf16.mxu1 %v674_v41  ;;  %v4702_v0 = vld [vmem:[#allocation9 + $0x98] sm:$0xff]   ;;  %v676_v41 = vpack.c.bf16 %v5184_v2, %v5129_v19 }
 0x17b   :  { %4302 = vmatpush3.bf16.msra.mxu0 %v4692_v7  ;;  %4103 = vmatprep.subr.bf16.mxu1 %v4693_v50  ;;  %v2144_v7 = vpack.c.bf16 %v5240_v57, %v2136_v47  ;;  %v4712_v47 = vld [vmem:[#allocation9 + $0xc0] sm:$0xff]  }
 0x17c   :  { %4303 = vmatprep.subr.bf16.mxu0 %v4694_v15  ;;  %v5358_v57 = vld [vmem:[#allocation2 + $0x82] sm:$0xff] }
 0x17e   :  { %4104 = vmatpush3.bf16.msra.mxu1 %v4693_v50  ;;  %v4705_v50 = vld [vmem:[#allocation9 + $0xc8] sm:$0xff]  }
 0x17f   :  { %4304 = vmatpush3.bf16.msra.mxu0 %v4694_v15  ;;  %4105 = vmatprep.subr.bf16.mxu1 %v4695_v1  ;;  %v4706_v15 = vld [vmem:[#allocation9 + $0xa8] sm:$0xff]  }
 0x180   :  { %4313 = vmatprep.subr.bf16.mxu0 %v4696_v17 }
 0x182   :  { %4306 = vmatmul.mubr.bf16.vlgmr.msra.gmra.mrb[16].mxu0 %v5179_v59  ;;  %4106 = vmatpush3.bf16.msra.mxu1 %v4695_v1  ;;  %v4703_v59 = vld [vmem:[#allocation9 + $0xc0] sm:$0xff]   ;;  %v4708_v1 = vld [vmem:[#allocation9 + $0xb0] sm:$0xff]  }
 0x183   :  { %4309 = vmatprep.mubr.bf16.mxu0 %v5218_v34  ;;  %4314 = vmatpush3.bf16.msra.mxu0 %v4696_v17  ;;  %v4704_v34 = vld [vmem:[#allocation9 + $0xa0] sm:$0xff]   ;;  %v5280_v17 = vld [vmem:[#allocation2 + $0x72] sm:$0xff] }
 0x184   :  { %4107 = vmatprep.subr.bf16.mxu1 %v4697_v23  ;;  %4315 = vmatprep.subr.bf16.mxu0 %v4698_v8 }
 0x186   :  { %4108 = vmatpush3.bf16.msra.mxu1 %v4697_v23  ;;  %v677_v23 = vpack.c.bf16 %v5280_v17, %v5171_v53 }
 0x187   :  { %4316 = vmatpush3.bf16.msra.mxu0 %v4698_v8  ;;  %4109 = vmatprep.subr.bf16.mxu1 %v4699_v27  ;;  %v4709_v8 = vld [vmem:[#allocation9 + $0xd8] sm:$0xff]  }
 0x188   :  { %4317 = vmatprep.subr.bf16.mxu0 %v4700_v62 }
 0x18a   :  { %4310 = vmatmul.mubr.bf16.gmra.mrb[20].mxu0 %v5238_v56  ;;  %4110 = vmatpush3.bf16.msra.mxu1 %v4699_v27  ;;  %v4707_v56 = vld [vmem:[#allocation9 + $0xd0] sm:$0xff]   ;;  %v4710_v27 = vld [vmem:[#allocation9 + $0xb8] sm:$0xff]  }
 0x18b   :  { %4318 = vmatpush3.bf16.msra.mxu0 %v4700_v62  ;;  %4329 = vmatprep.mubr.bf16.mxu0 %v2144_v7  ;;  %v4711_v62 = vld [vmem:[#allocation9 + $0xe0] sm:$0xff]   ;;  %v4714_v7 = vld [vmem:[#allocation9 + $0xc8] sm:$0xff]  }
 0x18c   :  { %4111 = vmatprep.subr.bf16.mxu1 %v4701_v60  ;;  %4319 = vmatprep.subr.bf16.mxu0 %v4702_v0 }
 0x18e   :  { %4112 = vmatpush3.bf16.msra.mxu1 %v4701_v60  ;;  %v2145_v60 = vpack.c.bf16 %v5220_v35, %v5228_v40  ;;  %v4755_v40 = vld [vmem:[#allocation9 + $0x190] sm:$0xff]  }
 0x18f   :  { %4320 = vmatpush3.bf16.msra.mxu0 %v4702_v0  ;;  %4121 = vmatprep.subr.bf16.mxu1 %v4703_v59  ;;  %v4713_v0 = vld [vmem:[#allocation9 + $0xe8] sm:$0xff]  }
 0x190   :  { %4321 = vmatprep.subr.bf16.mxu0 %v4704_v34 }
 0x191   :  { %4114 = vmatmul.mubr.bf16.vlgmr.msra.gmra.mrb[0].mxu1 %v675_v33  ;;  %v4717_v33 = vld [vmem:[#allocation9 + $0xf8] sm:$0xff]  }
 0x192   :  { %4117 = vmatprep.mubr.bf16.mxu1 %v676_v41  ;;  %4122 = vmatpush3.bf16.msra.mxu1 %v4703_v59  ;;  %v2146_v59 = vpack.c.bf16 %v5261_v24, %v5222_v37  ;;  %v4719_v41 = vld [vmem:[#allocation9 + $0x100] sm:$0xff]  }
 0x193   :  { %4322 = vmatpush3.bf16.msra.mxu0 %v4704_v34  ;;  %4123 = vmatprep.subr.bf16.mxu1 %v4705_v50 }
 0x194   :  { %4323 = vmatprep.subr.bf16.mxu0 %v4706_v15 }
 0x196   :  { %4124 = vmatpush3.bf16.msra.mxu1 %v4705_v50  ;;  %v4718_v50 = vld [vmem:[#allocation9 + $0xd8] sm:$0xff]  }
 0x197   :  { %4324 = vmatpush3.bf16.msra.mxu0 %v4706_v15  ;;  %4125 = vmatprep.subr.bf16.mxu1 %v4707_v56  ;;  %v4720_v15 = vld [vmem:[#allocation9 + $0xe0] sm:$0xff]  }
 0x198   :  { %4325 = vmatprep.subr.bf16.mxu0 %v4708_v1 }
 0x199   :  { %4118 = vmatmul.mubr.bf16.gmra.mrb[4].mxu1 %v677_v23  ;;  %v996_v23 = vld [vmem:[#allocation2 + $0x11] sm:$0xff] }
 0x19a   :  { %4126 = vmatpush3.bf16.msra.mxu1 %v4707_v56  ;;  %4137 = vmatprep.mubr.bf16.mxu1 %v839_v29  ;;  %v5291_v29 = vld [vmem:[#allocation2 + $0x112] sm:$0xff]  ;;  %v4721_v56 = vld [vmem:[#allocation9 + $0x108] sm:$0xff]   ;;  %v1004_v16 = vpack.c.bf16 %v5107_v63, %v996_v23 }
 0x19b   :  { %4326 = vmatpush3.bf16.msra.mxu0 %v4708_v1  ;;  %4127 = vmatprep.subr.bf16.mxu1 %v4709_v8  ;;  %v2147_v34 = vpack.c.bf16 %v5291_v29, %v5257_v42  ;;  %v4722_v1 = vld [vmem:[#allocation9 + $0xe8] sm:$0xff]   ;;  %v4731_v63 = vld [vmem:[#allocation9 + $0x130] sm:$0xff]   ;;  %v4767_v42 = vld [vmem:[#allocation9 + $0x1c0] sm:$0xff]  }
 0x19c   :  { %4327 = vmatprep.subr.bf16.mxu0 %v4710_v27  ;;  %v4753_v23 = vld [vmem:[#allocation9 + $0x188] sm:$0xff]  }
 0x19e   :  { %4128 = vmatpush3.bf16.msra.mxu1 %v4709_v8  ;;  %v842_v8 = vpack.c.bf16 %v5304_v38, %v5169_v52  ;;  %v4730_v52 = vld [vmem:[#allocation9 + $0x108] sm:$0xff]  }
 0x19f   :  { %4328 = vmatpush3.bf16.msra.mxu0 %v4710_v27  ;;  %4129 = vmatprep.subr.bf16.mxu1 %v4711_v62  ;;  %v4732_v27 = vld [vmem:[#allocation9 + $0x110] sm:$0xff]  }
 0x1a0   :  { %4337 = vmatprep.subr.bf16.mxu0 %v4712_v47 }
 0x1a2   :  { %4330 = vmatmul.mubr.bf16.vlgmr.msra.gmra.mrb[16].mxu0 %v2145_v60  ;;  %4130 = vmatpush3.bf16.msra.mxu1 %v4711_v62  ;;  %v5315_v62 = vld [vmem:[#allocation2 + $0x120] sm:$0xff]  ;;  %v1006_v60 = vpack.c.bf16 %v5190_v5, %v5158_v44 }
 0x1a3   :  { %4333 = vmatprep.mubr.bf16.mxu0 %v2146_v59  ;;  %4338 = vmatpush3.bf16.msra.mxu0 %v4712_v47  ;;  %v2312_v47 = vpack.c.bf16 %v5315_v62, %v5251_v9  ;;  %v1005_v9 = vpack.c.bf16 %v5165_v48, %v5322_v6  ;;  %v4741_v59 = vld [vmem:[#allocation9 + $0x158] sm:$0xff]  }
 0x1a4   :  { %4131 = vmatprep.subr.bf16.mxu1 %v4713_v0  ;;  %4339 = vmatprep.subr.bf16.mxu0 %v4714_v7 }
 0x1a6   :  { %4132 = vmatpush3.bf16.msra.mxu1 %v4713_v0  ;;  %v4738_v0 = vld [vmem:[#allocation9 + $0x128] sm:$0xff]  }
 0x1a7   :  { %4340 = vmatpush3.bf16.msra.mxu0 %v4714_v7  ;;  %4133 = vmatprep.subr.bf16.mxu1 %v4715_v12  ;;  %v1007_v7 = vpack.c.bf16 %v5328_v46, %v5198_v10 }
 0x1a8   :  { %4341 = vmatprep.subr.bf16.mxu0 %v4716_v20 }
 0x1aa   :  { %4334 = vmatmul.mubr.bf16.gmra.mrb[20].mxu0 %v2147_v34  ;;  %4134 = vmatpush3.bf16.msra.mxu1 %v4715_v12  ;;  %v4742_v12 = vld [vmem:[#allocation9 + $0x138] sm:$0xff]   ;;  %v4744_v34 = vld [vmem:[#allocation9 + $0x140] sm:$0xff]  }
 0x1ab   :  { %4342 = vmatpush3.bf16.msra.mxu0 %v4716_v20  ;;  %4353 = vmatprep.mubr.bf16.mxu0 %v2309_v58  ;;  %v4724_v58 = vld [vmem:[#allocation9 + $0xf0] sm:$0xff]   ;;  %v4743_v20 = vld [vmem:[#allocation9 + $0x160] sm:$0xff]  }
 0x1ac   :  { %4135 = vmatprep.subr.bf16.mxu1 %v4717_v33  ;;  %4343 = vmatprep.subr.bf16.mxu0 %v4718_v50 }
 0x1ae   :  { %4136 = vmatpush3.bf16.msra.mxu1 %v4717_v33  ;;  %v5335_v33 = vld [vmem:[#allocation2 + $0xe1] sm:$0xff] }
 0x1af   :  { %4344 = vmatpush3.bf16.msra.mxu0 %v4718_v50  ;;  %4145 = vmatprep.subr.bf16.mxu1 %v4719_v41  ;;  %v5337_v50 = vld [vmem:[#allocation2 + $0xd1] sm:$0xff] }
 0x1b0   :  { %4345 = vmatprep.subr.bf16.mxu0 %v4720_v15 }
 0x1b1   :  { %4138 = vmatmul.mubr.bf16.vlgmr.msra.gmra.mrb[0].mxu1 %v840_v22  ;;  %v4726_v22 = vld [vmem:[#allocation9 + $0xf8] sm:$0xff]  }
 0x1b2   :  { %4141 = vmatprep.mubr.bf16.mxu1 %v841_v3  ;;  %4146 = vmatpush3.bf16.msra.mxu1 %v4719_v41  ;;  %v4729_v3 = vld [vmem:[#allocation9 + $0x128] sm:$0xff]   ;;  %v2475_v41 = vpack.c.bf16 %v5335_v33, %v5337_v50 }
 0x1b3   :  { %4346 = vmatpush3.bf16.msra.mxu0 %v4720_v15  ;;  %4147 = vmatprep.subr.bf16.mxu1 %v4721_v56  ;;  %v4745_v15 = vld [vmem:[#allocation9 + $0x168] sm:$0xff]  }
 0x1b4   :  { %4347 = vmatprep.subr.bf16.mxu0 %v4722_v1 }
 0x1b6   :  { %4148 = vmatpush3.bf16.msra.mxu1 %v4721_v56  ;;  %v4746_v56 = vld [vmem:[#allocation9 + $0x148] sm:$0xff]  }
 0x1b7   :  { %4348 = vmatpush3.bf16.msra.mxu0 %v4722_v1  ;;  %4149 = vmatprep.subr.bf16.mxu1 %v4723_v26 }
 0x1b8   :  { %4349 = vmatprep.subr.bf16.mxu0 %v4724_v58 }
 0x1b9   :  { %4142 = vmatmul.mubr.bf16.gmra.mrb[4].mxu1 %v842_v8  ;;  %v5436_v8 = vpack.c.bf16 %v5171_v53, %v5184_v2  ;;  %v4758_v2 = vld [vmem:[#allocation9 + $0x178] sm:$0xff]  }
 0x1ba   :  { %4150 = vmatpush3.bf16.msra.mxu1 %v4723_v26  ;;  %4161 = vmatprep.mubr.bf16.mxu1 %v1004_v16  ;;  %v4749_v26 = vld [vmem:[#allocation9 + $0x178] sm:$0xff]   ;;  %v1327_v16 = vld [vmem:[#allocation2 + $0x20] sm:$0xff] }
 0x1bb   :  { %4350 = vmatpush3.bf16.msra.mxu0 %v4724_v58  ;;  %4151 = vmatprep.subr.bf16.mxu1 %v4725_v13  ;;  %v4750_v58 = vld [vmem:[#allocation9 + $0x158] sm:$0xff]  }
 0x1bc   :  { %4351 = vmatprep.subr.bf16.mxu0 %v4726_v22 }
 0x1be   :  { %4152 = vmatpush3.bf16.msra.mxu1 %v4725_v13  ;;  %v4756_v13 = vld [vmem:[#allocation9 + $0x170] sm:$0xff]  }
 0x1bf   :  { %4352 = vmatpush3.bf16.msra.mxu0 %v4726_v22  ;;  %4153 = vmatprep.subr.bf16.mxu1 %v4727_v43  ;;  %v1172_v22 = vpack.c.bf16 %v5358_v57, %v5280_v17  ;;  %v4762_v17 = vld [vmem:[#allocation9 + $0x188] sm:$0xff]  }
 0x1c0   :  { %4361 = vmatprep.subr.bf16.mxu0 %v4728_v49 }
 0x1c2   :  { %4354 = vmatmul.mubr.bf16.vlgmr.msra.gmra.mrb[16].mxu0 %v2310_v36  ;;  %4154 = vmatpush3.bf16.msra.mxu1 %v4727_v43  ;;  %v4736_v36 = vld [vmem:[#allocation9 + $0x120] sm:$0xff]  }
 0x1c3   :  { %4357 = vmatprep.mubr.bf16.mxu0 %v2311_v54  ;;  %4362 = vmatpush3.bf16.msra.mxu0 %v4728_v49  ;;  %v4735_v54 = vld [vmem:[#allocation9 + $0x140] sm:$0xff]  }
 0x1c4   :  { %4155 = vmatprep.subr.bf16.mxu1 %v4729_v3  ;;  %4363 = vmatprep.subr.bf16.mxu0 %v4730_v52  ;;  %v4759_v43 = vld [vmem:[#allocation9 + $0x1a0] sm:$0xff]  }
 0x1c5   :  { %v4760_v49 = vld [vmem:[#allocation9 + $0x180] sm:$0xff]  }
 0x1c6   :  { %4156 = vmatpush3.bf16.msra.mxu1 %v4729_v3  ;;  %v4761_v3 = vld [vmem:[#allocation9 + $0x1a8] sm:$0xff]  }
 0x1c7   :  { %4364 = vmatpush3.bf16.msra.mxu0 %v4730_v52  ;;  %4157 = vmatprep.subr.bf16.mxu1 %v4731_v63  ;;  %v5437_v52 = vpack.c.bf16 %v5222_v37, %v5220_v35  ;;  %v2798_v37 = vld [vmem:[#allocation2 + $0xd0] sm:$0xff] }
 0x1c8   :  { %4365 = vmatprep.subr.bf16.mxu0 %v4732_v27 }
 0x1ca   :  { %4358 = vmatmul.mubr.bf16.gmra.mrb[20].mxu0 %v2312_v47  ;;  %4158 = vmatpush3.bf16.msra.mxu1 %v4731_v63  ;;  %v4763_v63 = vld [vmem:[#allocation9 + $0x1b0] sm:$0xff]   ;;  %v5368_v47 = vld [vmem:[#allocation2 + $0x122] sm:$0xff] }
 0x1cb   :  { %4366 = vmatpush3.bf16.msra.mxu0 %v4732_v27  ;;  %4377 = vmatprep.mubr.bf16.mxu0 %v2474_v4  ;;  %v4740_v4 = vld [vmem:[#allocation9 + $0x130] sm:$0xff]   ;;  %v2642_v35 = vpack.c.bf16 %v5368_v47, %v5291_v29 }
 0x1cc   :  { %4159 = vmatprep.subr.bf16.mxu1 %v4733_v30  ;;  %4367 = vmatprep.subr.bf16.mxu0 %v4734_v51  ;;  %v4764_v27 = vld [vmem:[#allocation9 + $0x190] sm:$0xff]  }
 0x1cd   :  { %v1332_v29 = vld [vmem:[#allocation2 + $0x70] sm:$0xff] }
 0x1ce   :  { %4160 = vmatpush3.bf16.msra.mxu1 %v4733_v30  ;;  %v2797_v30 = vld [vmem:[#allocation2 + $0xc0] sm:$0xff] }
 0x1cf   :  { %4368 = vmatpush3.bf16.msra.mxu0 %v4734_v51  ;;  %4169 = vmatprep.subr.bf16.mxu1 %v4735_v54  ;;  %v4765_v51 = vld [vmem:[#allocation9 + $0x1b8] sm:$0xff]   ;;  %v2805_v24 = vpack.c.bf16 %v2798_v37, %v2797_v30  ;;  %v2966_v30 = vld [vmem:[#allocation2 + $0x101] sm:$0xff] }
 0x1d0   :  { %4369 = vmatprep.subr.bf16.mxu0 %v4736_v36  ;;  %v4794_v37 = vld [vmem:[#allocation9 + $0x208] sm:$0xff]  }
 0x1d1   :  { %4162 = vmatmul.mubr.bf16.vlgmr.msra.gmra.mrb[0].mxu1 %v1005_v9  ;;  %v1331_v9 = vld [vmem:[#allocation2 + $0x60] sm:$0xff] }
 0x1d2   :  { %4165 = vmatprep.mubr.bf16.mxu1 %v1006_v60  ;;  %4170 = vmatpush3.bf16.msra.mxu1 %v4735_v54  ;;  %v4766_v54 = vld [vmem:[#allocation9 + $0x198] sm:$0xff]  }
 0x1d3   :  { %4370 = vmatpush3.bf16.msra.mxu0 %v4736_v36  ;;  %4171 = vmatprep.subr.bf16.mxu1 %v4737_v14  ;;  %v4768_v36 = vld [vmem:[#allocation9 + $0x1a0] sm:$0xff]  }
 0x1d4   :  { %4371 = vmatprep.subr.bf16.mxu0 %v4738_v0 }
 0x1d6   :  { %4172 = vmatpush3.bf16.msra.mxu1 %v4737_v14  ;;  %v1329_v14 = vld [vmem:[#allocation2 + $0x40] sm:$0xff] }
 0x1d7   :  { %4372 = vmatpush3.bf16.msra.mxu0 %v4738_v0  ;;  %4173 = vmatprep.subr.bf16.mxu1 %v4739_v39  ;;  %v4769_v0 = vld [vmem:[#allocation9 + $0x1c8] sm:$0xff]  }
 0x1d8   :  { %4373 = vmatprep.subr.bf16.mxu0 %v4740_v4 }
 0x1d9   :  { %4166 = vmatmul.mubr.bf16.gmra.mrb[4].mxu1 %v1007_v7  ;;  %v4771_v7 = vld [vmem:[#allocation9 + $0x1d0] sm:$0xff]  }
 0x1da   :  { %4174 = vmatpush3.bf16.msra.mxu1 %v4739_v39  ;;  %4185 = vmatprep.mubr.bf16.mxu1 %v1169_v32  ;;  %v5344_v32 = vld [vmem:[#allocation2 + $0x111] sm:$0xff]  ;;  %v1337_v39 = vpack.c.bf16 %v1332_v29, %v1331_v9  ;;  %v4803_v29 = vld [vmem:[#allocation10] sm:$0xff]  }
 0x1db   :  { %4374 = vmatpush3.bf16.msra.mxu0 %v4740_v4  ;;  %4175 = vmatprep.subr.bf16.mxu1 %v4741_v59  ;;  %v2477_v1 = vpack.c.bf16 %v290_v25, %v5344_v32  ;;  %v5435_v25 = vpack.c.bf16 %v5129_v19, %v5127_v18  ;;  %v1328_v18 = vld [vmem:[#allocation2 + $0x30] sm:$0xff]  ;;  %v4757_v19 = vld [vmem:[#allocation9 + $0x198] sm:$0xff]   ;;  %v4770_v4 = vld [vmem:[#allocation9 + $0x1a8] sm:$0xff]  }
 0x1dc   :  { %4375 = vmatprep.subr.bf16.mxu0 %v4742_v12  ;;  %v1335_v53 = vpack.c.bf16 %v1328_v18, %v1327_v16  ;;  %v4784_v18 = vld [vmem:[#allocation9 + $0x1e0] sm:$0xff]   ;;  %v3128_v9 = vld [vmem:[#allocation2 + $0xd2] sm:$0xff] }
 0x1de   :  { %4176 = vmatpush3.bf16.msra.mxu1 %v4741_v59  ;;  %v4772_v59 = vld [vmem:[#allocation9 + $0x1b0] sm:$0xff]  }
 0x1df   :  { %4376 = vmatpush3.bf16.msra.mxu0 %v4742_v12  ;;  %4177 = vmatprep.subr.bf16.mxu1 %v4743_v20  ;;  %v1492_v12 = vld [vmem:[#allocation2 + $0x21] sm:$0xff] }
 0x1e0   :  { %4385 = vmatprep.subr.bf16.mxu0 %v4744_v34 }
 0x1e2   :  { %4378 = vmatmul.mubr.bf16.vlgmr.msra.gmra.mrb[16].mxu0 %v2475_v41  ;;  %4178 = vmatpush3.bf16.msra.mxu1 %v4743_v20  ;;  %v4811_v20 = vld [vmem:[#allocation2] sm:$0xff]  ;;  %v4773_v41 = vld [vmem:[#allocation9 + $0x1d8] sm:$0xff]  }
 0x1e3   :  { %4381 = vmatprep.mubr.bf16.mxu0 %v2476_v61  ;;  %4386 = vmatpush3.bf16.msra.mxu0 %v4744_v34  ;;  %v4752_v61 = vld [vmem:[#allocation9 + $0x160] sm:$0xff]   ;;  %v1338_v34 = vpack.c.bf16 %v4811_v20, %v5304_v38 }
 0x1e4   :  { %4179 = vmatprep.subr.bf16.mxu1 %v4745_v15  ;;  %4387 = vmatprep.subr.bf16.mxu0 %v4746_v56  ;;  %v2799_v38 = vld [vmem:[#allocation2 + $0xe0] sm:$0xff] }
 0x1e6   :  { %4180 = vmatpush3.bf16.msra.mxu1 %v4745_v15  ;;  %v1500_v15 = vpack.c.bf16 %v5322_v6, %v1492_v12  ;;  %v4778_v6 = vld [vmem:[#allocation9 + $0x1c8] sm:$0xff]   ;;  %v1662_v12 = vld [vmem:[#allocation2 + $0x72] sm:$0xff] }
 0x1e7   :  { %4388 = vmatpush3.bf16.msra.mxu0 %v4746_v56  ;;  %4181 = vmatprep.subr.bf16.mxu1 %v4747_v21  ;;  %v4774_v56 = vld [vmem:[#allocation9 + $0x1b8] sm:$0xff]  }
 0x1e8   :  { %4389 = vmatprep.subr.bf16.mxu0 %v4748_v28 }
 0x1ea   :  { %4382 = vmatmul.mubr.bf16.gmra.mrb[20].mxu0 %v2477_v1  ;;  %4182 = vmatpush3.bf16.msra.mxu1 %v4747_v21  ;;  %v4775_v21 = vld [vmem:[#allocation9 + $0x1e0] sm:$0xff]   ;;  %v2800_v1 = vld [vmem:[#allocation2 + $0xf0] sm:$0xff] }
 0x1eb   :  { %4390 = vmatpush3.bf16.msra.mxu0 %v4748_v28  ;;  %4401 = vmatprep.mubr.bf16.mxu0 %v5434_v11  ;;  %v4776_v28 = vld [vmem:[#allocation9 + $0x1c0] sm:$0xff]   ;;  %v2806_v11 = vpack.c.bf16 %v2800_v1, %v2799_v38  ;;  %v4806_v1 = vld [vmem:[#allocation10 + $0x18] sm:$0xff]  }
 0x1ec   :  { %4183 = vmatprep.subr.bf16.mxu1 %v4749_v26  ;;  %4391 = vmatprep.subr.bf16.mxu0 %v4750_v58  ;;  %v3130_v38 = vld [vmem:[#allocation2 + $0xf2] sm:$0xff] }
 0x1ee   :  { %4184 = vmatpush3.bf16.msra.mxu1 %v4749_v26  ;;  %v2801_v26 = vld [vmem:[#allocation2 + $0x100] sm:$0xff] }
 0x1ef   :  { %4392 = vmatpush3.bf16.msra.mxu0 %v4750_v58  ;;  %4193 = vmatprep.subr.bf16.mxu1 %v4751_v31  ;;  %v2802_v58 = vld [vmem:[#allocation2 + $0x110] sm:$0xff] }
 0x1f0   :  { %4393 = vmatprep.subr.bf16.mxu0 %v4752_v61 }
 0x1f1   :  { %4186 = vmatmul.mubr.bf16.vlgmr.msra.gmra.mrb[0].mxu1 %v5435_v25  ;;  %v2962_v25 = vld [vmem:[#allocation2 + $0xc1] sm:$0xff] }
 0x1f2   :  { %4189 = vmatprep.mubr.bf16.mxu1 %v5436_v8  ;;  %4194 = vmatpush3.bf16.msra.mxu1 %v4751_v31  ;;  %v4777_v31 = vld [vmem:[#allocation9 + $0x1e8] sm:$0xff]   ;;  %v2808_v8 = vpack.c.bf16 %v4811_v20, %v5315_v62  ;;  %v2970_v16 = vpack.c.bf16 %v5337_v50, %v2962_v25  ;;  %v5438_v62 = vpack.c.bf16 %v5158_v44, %v5165_v48  ;;  %v4789_v44 = vld [vmem:[#allocation9 + $0x218] sm:$0xff]  }
 0x1f3   :  { %4394 = vmatpush3.bf16.msra.mxu0 %v4752_v61  ;;  %4195 = vmatprep.subr.bf16.mxu1 %v4753_v23  ;;  %v2807_v61 = vpack.c.bf16 %v2802_v58, %v2801_v26  ;;  %v5439_v50 = vpack.c.bf16 %v5198_v10, %v5190_v5  ;;  %v4791_v5 = vld [vmem:[#allocation9 + $0x220] sm:$0xff]   ;;  %v4804_v20 = vld [vmem:[#allocation10 + $0x8] sm:$0xff]   ;;  %v4802_v26 = vld [vmem:[#allocation9 + $0x238] sm:$0xff]  }
 0x1f4   :  { %4395 = vmatprep.subr.bf16.mxu0 %v4754_v55  ;;  %v4792_v10 = vld [vmem:[#allocation9 + $0x200] sm:$0xff]  }
 0x1f5   :  { %v4807_v58 = vld [vmem:[#allocation10 + $0x20] sm:$0xff]  }
 0x1f6   :  { %4196 = vmatpush3.bf16.msra.mxu1 %v4753_v23  ;;  %v4779_v23 = vld [vmem:[#allocation9 + $0x1f0] sm:$0xff]  }
 0x1f7   :  { %4396 = vmatpush3.bf16.msra.mxu0 %v4754_v55  ;;  %4197 = vmatprep.subr.bf16.mxu1 %v4755_v40  ;;  %v4780_v55 = vld [vmem:[#allocation9 + $0x1d0] sm:$0xff]  }
 0x1f8   :  { %4397 = vmatprep.subr.bf16.mxu0 %v4756_v13 }
 0x1f9   :  { %4190 = vmatmul.mubr.bf16.gmra.mrb[4].mxu1 %v1172_v22  ;;  %v4783_v22 = vld [vmem:[#allocation9 + $0x200] sm:$0xff]  }
 0x1fa   :  { %4198 = vmatpush3.bf16.msra.mxu1 %v4755_v40  ;;  %4209 = vmatprep.mubr.bf16.mxu1 %v1335_v53  ;;  %v4781_v40 = vld [vmem:[#allocation9 + $0x1f8] sm:$0xff]   ;;  %v4786_v53 = vld [vmem:[#allocation9 + $0x1e8] sm:$0xff]  }
 0x1fb   :  { %4398 = vmatpush3.bf16.msra.mxu0 %v4756_v13  ;;  %4199 = vmatprep.subr.bf16.mxu1 %v4757_v19  ;;  %v4782_v13 = vld [vmem:[#allocation9 + $0x1d8] sm:$0xff]  }
 0x1fc   :  { %4399 = vmatprep.subr.bf16.mxu0 %v4758_v2 }
 0x1fe   :  { %4200 = vmatpush3.bf16.msra.mxu1 %v4757_v19  ;;  %v4785_v19 = vld [vmem:[#allocation9 + $0x208] sm:$0xff]  }
 0x1ff   :  { %4400 = vmatpush3.bf16.msra.mxu0 %v4758_v2  ;;  %4201 = vmatprep.subr.bf16.mxu1 %v4759_v43  ;;  %v4787_v2 = vld [vmem:[#allocation9 + $0x210] sm:$0xff]  }
 0x200   :  { %4409 = vmatprep.subr.bf16.mxu0 %v4760_v49 }
 0x202   :  { %4402 = vmatmul.mubr.bf16.vlgmr.msra.gmra.mrb[16].mxu0 %v5437_v52  ;;  %4202 = vmatpush3.bf16.msra.mxu1 %v4759_v43  ;;  %v1499_v43 = vld [vmem:[#allocation2 + $0x91] sm:$0xff] }
 0x203   :  { %4405 = vmatprep.mubr.bf16.mxu0 %v2641_v45  ;;  %4410 = vmatpush3.bf16.msra.mxu0 %v4760_v49  ;;  %v1330_v45 = vld [vmem:[#allocation2 + $0x50] sm:$0xff] }
 0x204   :  { %4203 = vmatprep.subr.bf16.mxu1 %v4761_v3  ;;  %4411 = vmatprep.subr.bf16.mxu0 %v4762_v17  ;;  %v1336_v60 = vpack.c.bf16 %v1330_v45, %v1329_v14  ;;  %v4788_v49 = vld [vmem:[#allocation9 + $0x1f0] sm:$0xff]   ;;  %v4797_v14 = vld [vmem:[#allocation9 + $0x238] sm:$0xff]  }
 0x205   :  { %v1658_v52 = vld [vmem:[#allocation2 + $0x32] sm:$0xff] }
 0x206   :  { %4204 = vmatpush3.bf16.msra.mxu1 %v4761_v3  ;;  %v1657_v3 = vld [vmem:[#allocation2 + $0x22] sm:$0xff]  ;;  %v2969_v45 = vld [vmem:[#allocation2 + $0x131] sm:$0xff] }
 0x207   :  { %4412 = vmatpush3.bf16.msra.mxu0 %v4762_v17  ;;  %4205 = vmatprep.subr.bf16.mxu1 %v4763_v63  ;;  %v1503_v17 = vpack.c.bf16 %v1499_v43, %v5328_v46  ;;  %v1665_v48 = vpack.c.bf16 %v1658_v52, %v1657_v3 }
 0x208   :  { %4413 = vmatprep.subr.bf16.mxu0 %v4764_v27 }
 0x20a   :  { %4406 = vmatmul.mubr.bf16.gmra.mrb[20].mxu0 %v2642_v35  ;;  %4206 = vmatpush3.bf16.msra.mxu1 %v4763_v63  ;;  %v4790_v63 = vld [vmem:[#allocation9 + $0x1f8] sm:$0xff]   ;;  %v4793_v35 = vld [vmem:[#allocation9 + $0x228] sm:$0xff]  }
 0x20b   :  { %4414 = vmatpush3.bf16.msra.mxu0 %v4764_v27  ;;  %4425 = vmatprep.mubr.bf16.mxu0 %v2805_v24  ;;  %v2965_v27 = vld [vmem:[#allocation2 + $0xf1] sm:$0xff] }
 0x20c   :  { %4207 = vmatprep.subr.bf16.mxu1 %v4765_v51  ;;  %4415 = vmatprep.subr.bf16.mxu0 %v4766_v54  ;;  %v2971_v46 = vpack.c.bf16 %v2965_v27, %v5335_v33  ;;  %v4796_v24 = vld [vmem:[#allocation9 + $0x210] sm:$0xff]  }
 0x20e   :  { %4208 = vmatpush3.bf16.msra.mxu1 %v4765_v51  ;;  %v2972_v51 = vpack.c.bf16 %v5344_v32, %v2966_v30 }
 0x20f   :  { %4416 = vmatpush3.bf16.msra.mxu0 %v4766_v54  ;;  %4217 = vmatprep.subr.bf16.mxu1 %v4767_v42  ;;  %v4795_v54 = vld [vmem:[#allocation9 + $0x230] sm:$0xff]  }
 0x210   :  { %4417 = vmatprep.subr.bf16.mxu0 %v4768_v36 }
 0x211   :  { %4210 = vmatmul.mubr.bf16.vlgmr.msra.gmra.mrb[0].mxu1 %v1336_v60  ;;  %v4798_v60 = vld [vmem:[#allocation9 + $0x218] sm:$0xff]  }
 0x212   :  { %4213 = vmatprep.mubr.bf16.mxu1 %v1337_v39  ;;  %4218 = vmatpush3.bf16.msra.mxu1 %v4767_v42  ;;  %v2968_v42 = vld [vmem:[#allocation2 + $0x121] sm:$0xff] }
 0x213   :  { %4418 = vmatpush3.bf16.msra.mxu0 %v4768_v36  ;;  %4219 = vmatprep.subr.bf16.mxu1 %v4769_v0  ;;  %v3127_v36 = vld [vmem:[#allocation2 + $0xc2] sm:$0xff]  ;;  %v2973_v33 = vpack.c.bf16 %v2969_v45, %v2968_v42 }
 0x214   :  { %4419 = vmatprep.subr.bf16.mxu0 %v4770_v4  ;;  %v3135_v32 = vpack.c.bf16 %v3128_v9, %v3127_v36  ;;  %v4799_v39 = vld [vmem:[#allocation9 + $0x220] sm:$0xff]  }
 0x216   :  { %4220 = vmatpush3.bf16.msra.mxu1 %v4769_v0  ;;  %v1660_v0 = vld [vmem:[#allocation2 + $0x52] sm:$0xff] }
 0x217   :  { %4420 = vmatpush3.bf16.msra.mxu0 %v4770_v4  ;;  %4221 = vmatprep.subr.bf16.mxu1 %v4771_v7  ;;  %v1661_v4 = vld [vmem:[#allocation2 + $0x62] sm:$0xff] }
 0x218   :  { %4421 = vmatprep.subr.bf16.mxu0 %v4772_v59 }
 0x219   :  { %4214 = vmatmul.mubr.bf16.gmra.mrb[4].mxu1 %v1338_v34  ;;  %v1667_v34 = vpack.c.bf16 %v1662_v12, %v1661_v4 }
 0x21a   :  { %4222 = vmatpush3.bf16.msra.mxu1 %v4771_v7  ;;  %4233 = vmatprep.mubr.bf16.mxu1 %v1500_v15  ;;  %v1659_v7 = vld [vmem:[#allocation2 + $0x42] sm:$0xff]  ;;  %v4805_v15 = vld [vmem:[#allocation10 + $0x10] sm:$0xff]  }
 0x21b   :  { %4422 = vmatpush3.bf16.msra.mxu0 %v4772_v59  ;;  %4223 = vmatprep.subr.bf16.mxu1 %v4773_v41  ;;  %v1666_v59 = vpack.c.bf16 %v1660_v0, %v1659_v7 }
 0x21c   :  { %4423 = vmatprep.subr.bf16.mxu0 %v4774_v56 }
 0x21e   :  { %4224 = vmatpush3.bf16.msra.mxu1 %v4773_v41  ;;  %v4800_v41 = vld [vmem:[#allocation9 + $0x228] sm:$0xff]  }
 0x21f   :  { %4424 = vmatpush3.bf16.msra.mxu0 %v4774_v56  ;;  %4225 = vmatprep.subr.bf16.mxu1 %v4775_v21  ;;  %v1664_v56 = vld [vmem:[#allocation2 + $0x92] sm:$0xff] }
 0x220   :  { %4433 = vmatprep.subr.bf16.mxu0 %v4776_v28 }
 0x222   :  { %4426 = vmatmul.mubr.bf16.vlgmr.msra.gmra.mrb[16].mxu0 %v2806_v11  ;;  %4226 = vmatpush3.bf16.msra.mxu1 %v4775_v21  ;;  %v4801_v21 = vld [vmem:[#allocation9 + $0x230] sm:$0xff]   ;;  %v3131_v11 = vld [vmem:[#allocation2 + $0x102] sm:$0xff] }
 0x223   :  { %4429 = vmatprep.mubr.bf16.mxu0 %v2807_v61  ;;  %4434 = vmatpush3.bf16.msra.mxu0 %v4776_v28  ;;  %v1668_v28 = vpack.c.bf16 %v1664_v56, %v5358_v57  ;;  %v4808_v61 = vld [vmem:[#allocation10 + $0x28] sm:$0xff]  }
 0x224   :  { %4227 = vmatprep.subr.bf16.mxu1 %v4777_v31  ;;  %4435 = vmatprep.subr.bf16.mxu0 %v4778_v6 }
 0x226   :  { %4228 = vmatpush3.bf16.msra.mxu1 %v4777_v31  ;;  %v3132_v31 = vld [vmem:[#allocation2 + $0x112] sm:$0xff] }
 0x227   :  { %4436 = vmatpush3.bf16.msra.mxu0 %v4778_v6  ;;  %4229 = vmatprep.subr.bf16.mxu1 %v4779_v23  ;;  %v3129_v6 = vld [vmem:[#allocation2 + $0xe2] sm:$0xff]  ;;  %v3137_v57 = vpack.c.bf16 %v3132_v31, %v3131_v11 }
 0x228   :  { %4437 = vmatprep.subr.bf16.mxu0 %v4780_v55 }
 0x22a   :  { %4430 = vmatmul.mubr.bf16.gmra.mrb[20].mxu0 %v2808_v8  ;;  %4230 = vmatpush3.bf16.msra.mxu1 %v4779_v23  ;;  %v3136_v23 = vpack.c.bf16 %v3130_v38, %v3129_v6  ;;  %v4809_v8 = vld [vmem:[#allocation10 + $0x30] sm:$0xff]  }
 0x22b   :  { %4438 = vmatpush3.bf16.msra.mxu0 %v4780_v55  ;;  %4449 = vmatprep.mubr.bf16.mxu0 %v2970_v16  ;;  %v3134_v55 = vld [vmem:[#allocation2 + $0x132] sm:$0xff] }
 0x22c   :  { %4231 = vmatprep.subr.bf16.mxu1 %v4781_v40  ;;  %4439 = vmatprep.subr.bf16.mxu0 %v4782_v13  ;;  %v3138_v25 = vpack.c.bf16 %v3134_v55, %v5368_v47 }
 0x22e   :  { %4232 = vmatpush3.bf16.msra.mxu1 %v4781_v40  ;;  %v4810_v40 = vld [vmem:[#allocation10 + $0x38] sm:$0xff]  }
 0x22f   :  { %4440 = vmatpush3.bf16.msra.mxu0 %v4782_v13  ;;  %4241 = vmatprep.subr.bf16.mxu1 %v4783_v22  ;;  %v3759_v13 = vld [vmem:[%s5430_s4] ss:$0 sm:$0xff] }
 0x230   :  { %4441 = vmatprep.subr.bf16.mxu0 %v4784_v18 }
 0x231   :  { %4234 = vmatmul.mubr.bf16.vlgmr.msra.gmra.mrb[0].mxu1 %v5438_v62 }
 0x232   :  { %4237 = vmatprep.mubr.bf16.mxu1 %v5439_v50  ;;  %4242 = vmatpush3.bf16.msra.mxu1 %v4783_v22 }
 0x233   :  { %4442 = vmatpush3.bf16.msra.mxu0 %v4784_v18  ;;  %4243 = vmatprep.subr.bf16.mxu1 %v4785_v19 }
 0x234   :  { %4443 = vmatprep.subr.bf16.mxu0 %v4786_v53 }
 0x236   :  { %4244 = vmatpush3.bf16.msra.mxu1 %v4785_v19 }
 0x237   :  { %4444 = vmatpush3.bf16.msra.mxu0 %v4786_v53  ;;  %4245 = vmatprep.subr.bf16.mxu1 %v4787_v2 }
 0x238   :  { %4445 = vmatprep.subr.bf16.mxu0 %v4788_v49 }
 0x239   :  { %4238 = vmatmul.mubr.bf16.gmra.mrb[4].mxu1 %v1503_v17 }
 0x23a   :  { %4246 = vmatpush3.bf16.msra.mxu1 %v4787_v2  ;;  %4257 = vmatprep.mubr.bf16.mxu1 %v1665_v48 }
 0x23b   :  { %4446 = vmatpush3.bf16.msra.mxu0 %v4788_v49  ;;  %4247 = vmatprep.subr.bf16.mxu1 %v4789_v44 }
 0x23c   :  { %4447 = vmatprep.subr.bf16.mxu0 %v4790_v63 }
 0x23e   :  { %4248 = vmatpush3.bf16.msra.mxu1 %v4789_v44 }
 0x23f   :  { %4448 = vmatpush3.bf16.msra.mxu0 %v4790_v63  ;;  %4249 = vmatprep.subr.bf16.mxu1 %v4791_v5 }
 0x240   :  { %4457 = vmatprep.subr.bf16.mxu0 %v4792_v10 }
 0x242   :  { %4450 = vmatmul.mubr.bf16.vlgmr.msra.gmra.mrb[16].mxu0 %v2971_v46  ;;  %4250 = vmatpush3.bf16.msra.mxu1 %v4791_v5 }
 0x243   :  { %4453 = vmatprep.mubr.bf16.mxu0 %v2972_v51  ;;  %4458 = vmatpush3.bf16.msra.mxu0 %v4792_v10 }
 0x244   :  { %4251 = vmatprep.subr.bf16.mxu1 %v4793_v35  ;;  %4459 = vmatprep.subr.bf16.mxu0 %v4794_v37 }
 0x246   :  { %4252 = vmatpush3.bf16.msra.mxu1 %v4793_v35 }
 0x247   :  { %4460 = vmatpush3.bf16.msra.mxu0 %v4794_v37  ;;  %4253 = vmatprep.subr.bf16.mxu1 %v4795_v54 }
 0x248   :  { %4461 = vmatprep.subr.bf16.mxu0 %v4796_v24 }
 0x24a   :  { %4454 = vmatmul.mubr.bf16.gmra.mrb[20].mxu0 %v2973_v33  ;;  %4254 = vmatpush3.bf16.msra.mxu1 %v4795_v54 }
 0x24b   :  { %4462 = vmatpush3.bf16.msra.mxu0 %v4796_v24  ;;  %4473 = vmatprep.mubr.bf16.mxu0 %v3135_v32 }
 0x24c   :  { %4255 = vmatprep.subr.bf16.mxu1 %v4797_v14  ;;  %4463 = vmatprep.subr.bf16.mxu0 %v4798_v60 }
 0x24e   :  { %4256 = vmatpush3.bf16.msra.mxu1 %v4797_v14 }
 0x24f   :  { %4464 = vmatpush3.bf16.msra.mxu0 %v4798_v60  ;;  %4481 = vmatprep.subr.bf16.mxu1 %v4803_v29 }
 0x250   :  { %4465 = vmatprep.subr.bf16.mxu0 %v4799_v39 }
 0x251   :  { %4258 = vmatmul.mubr.bf16.vlgmr.msra.gmra.mrb[0].mxu1 %v1666_v59 }
 0x252   :  { %4261 = vmatprep.mubr.bf16.mxu1 %v1667_v34  ;;  %4482 = vmatpush3.bf16.msra.mxu1 %v4803_v29 }
 0x253   :  { %4466 = vmatpush3.bf16.msra.mxu0 %v4799_v39  ;;  %4483 = vmatprep.subr.bf16.mxu1 %v4804_v20 }
 0x254   :  { %4467 = vmatprep.subr.bf16.mxu0 %v4800_v41 }
 0x256   :  { %4484 = vmatpush3.bf16.msra.mxu1 %v4804_v20 }
 0x257   :  { %4468 = vmatpush3.bf16.msra.mxu0 %v4800_v41  ;;  %4485 = vmatprep.subr.bf16.mxu1 %v4805_v15 }
 0x258   :  { %4469 = vmatprep.subr.bf16.mxu0 %v4801_v21 }
 0x259   :  { %4262 = vmatmul.mubr.bf16.gmra.mrb[4].mxu1 %v1668_v28 }
 0x25a   :  { %4486 = vmatpush3.bf16.msra.mxu1 %v4805_v15 }
 0x25b   :  { %4470 = vmatpush3.bf16.msra.mxu0 %v4801_v21  ;;  %4487 = vmatprep.subr.bf16.mxu1 %v4806_v1 }
 0x25c   :  { %4471 = vmatprep.subr.bf16.mxu0 %v4802_v26 }
 0x25e   :  { %4488 = vmatpush3.bf16.msra.mxu1 %v4806_v1 }
 0x25f   :  { %4472 = vmatpush3.bf16.msra.mxu0 %v4802_v26  ;;  %4489 = vmatprep.subr.bf16.mxu1 %v4807_v58 }
 0x262   :  { %4474 = vmatmul.mubr.bf16.vlgmr.msra.gmra.mrb[16].mxu0 %v3136_v23  ;;  %4490 = vmatpush3.bf16.msra.mxu1 %v4807_v58  ;;  %v3373_v23 = vld [vmem:[#allocation4 + $0x10] sm:$0xff] }
 0x263   :  { %4477 = vmatprep.mubr.bf16.mxu0 %v3137_v57  ;;  %4491 = vmatprep.subr.bf16.mxu1 %v4808_v61 }
 0x266   :  { %4492 = vmatpush3.bf16.msra.mxu1 %v4808_v61  ;;  %v5393_v61 = vld [vmem:[%s5432_s6] ss:$0 sm:$0xff]  ;;  %s4939_s6 = smov [#allocation12]  }
 0x267   :  { %4493 = vmatprep.subr.bf16.mxu1 %v4809_v8  ;;  %s3592_s8 = sshll.u32 %s4939_s6, 4  ;;  %s3593_s8 = int_to_ptr.vmem [resolvable:$true] %s3592_s8 }
 0x268   :  { %s4900_s9 = scalar_lea.vmem %s3593_s8, 2048  ;;  %p4905_p5 = scmp.lt.s32.totalorder %s3593_s8, %s3593_s8 }
 0x269   :  { %p4901_p4 = scmp.ne.s32.totalorder %s3593_s8, %s4900_s9  ;;  %p4906_p6 = scmp.lt.s32.totalorder %s4900_s9, %s4900_s9 }
 0x26a   :  { %4478 = vmatmul.mubr.bf16.gmra.mrb[20].mxu0 %v3138_v25  ;;  %4494 = vmatpush3.bf16.msra.mxu1 %v4809_v8  ;;  %v3371_v25 = vld [vmem:[#allocation4] sm:$0xff] }
 0x26b   :  { %4495 = vmatprep.subr.bf16.mxu1 %v4810_v40  ;;  %p4907_p7 = por %p4906_p6, %p4905_p5 }
 0x26d   :  { %p4908_p8 = pnand %p4907_p7, %p4901_p4 }
 0x26e   :  { %4496 = vmatpush3.bf16.msra.mxu1 %v4810_v40 }
 0x324   :  { %v4259_v16 = vpop.f32.mrb[0].mxu1 }
 0x325   :  { %v3317_v22 = vadd.f32 %v4259_v16, %v3759_v13  ;;  %v1767_v18 = vpop.f32.mrb[1].mxu1 }
 0x326   :  { %v3315_v19 = vadd.f32 %v3759_v13, %v1767_v18  ;;  %v4260_v53 = vpop.f32.mrb[2].mxu1 }
 0x327   :  { %v3318_v62 = vadd.f32 %v4260_v53, %v3759_v13  ;;  %v1770_v50 = vpop.f32.mrb[3].mxu1  ;;  %v3333_v47 = vmax.f32 %v3317_v22, 0.0 }
 0x328   :  { %v3316_v2 = vadd.f32 %v3759_v13, %v1770_v50  ;;  %v3331_v49 = vmax.f32 %v3315_v19, 0.0  ;;  %v3372_v19 = vld [vmem:[#allocation4 + $0x8] sm:$0xff] }
 0x329   :  { %v3334_v43 = vmax.f32 %v3318_v62, 0.0 }
 0x32a   :  { %v3332_v3 = vmax.f32 %v3316_v2, 0.0 }
 0x32b   :  { %v3348_v17 = vpack.c.bf16 %v3334_v43, %v3333_v47 }
 0x32c   :  { %v3347_v52 = vpack.c.bf16 %v3332_v3, %v3331_v49  ;;  %v4263_v44 = vpop.f32.mrb[4].mxu1 }
 0x32d   :  { %v3321_v48 = vadd.f32 %v4263_v44, %v3759_v13  ;;  %v1783_v63 = vpop.f32.mrb[5].mxu1 }
 0x32e   :  { %v3319_v5 = vadd.f32 %v3759_v13, %v1783_v63  ;;  %v4264_v10 = vpop.f32.mrb[6].mxu1  ;;  %4497 = vmatprep.mubr.bf16.mxu1 %v3347_v52  ;;  %v3377_v52 = vld [vmem:[#allocation4 + $0x30] sm:$0xff]  ;;  %v3375_v63 = vld [vmem:[#allocation4 + $0x20] sm:$0xff] }
 0x32f   :  { %v3322_v27 = vadd.f32 %v4264_v10, %v3759_v13  ;;  %v1786_v30 = vpop.f32.mrb[7].mxu1  ;;  %4498 = vmatmul.mubr.bf16.vlgmr.msra.gmra.mrb[8].mxu1 %v3348_v17  ;;  %v3337_v35 = vmax.f32 %v3321_v48, 0.0 }
 0x330   :  { %v3320_v46 = vadd.f32 %v3759_v13, %v1786_v30  ;;  %v3335_v51 = vmax.f32 %v3319_v5, 0.0 }
 0x331   :  { %v3338_v37 = vmax.f32 %v3322_v27, 0.0  ;;  %v3378_v27 = vld [vmem:[#allocation4 + $0x38] sm:$0xff] }
 0x332   :  { %v3336_v54 = vmax.f32 %v3320_v46, 0.0 }
 0x333   :  { %v3350_v24 = vpack.c.bf16 %v3338_v37, %v3337_v35  ;;  %v3376_v37 = vld [vmem:[#allocation4 + $0x28] sm:$0xff] }
 0x334   :  { %v3349_v42 = vpack.c.bf16 %v3336_v54, %v3335_v51 }
 0x335   :  { %v4475_v45 = vpop.f32.mrb[16].mxu0 }
 0x336   :  { %v3325_v36 = vadd.f32 %v4475_v45, %v3759_v13  ;;  %v3237_v33 = vpop.f32.mrb[17].mxu0  ;;  %4501 = vmatprep.mubr.bf16.mxu1 %v3349_v42 }
 0x337   :  { %v3323_v9 = vadd.f32 %v3759_v13, %v3237_v33  ;;  %v4476_v14 = vpop.f32.mrb[18].mxu0  ;;  %4502 = vmatmul.mubr.bf16.gmra.mrb[12].mxu1 %v3350_v24 }
 0x338   :  { %v3326_v60 = vadd.f32 %v4476_v14, %v3759_v13  ;;  %v3240_v32 = vpop.f32.mrb[19].mxu0  ;;  %v3341_v0 = vmax.f32 %v3325_v36, 0.0 }
 0x339   :  { %v3324_v29 = vadd.f32 %v3759_v13, %v3240_v32  ;;  %v3339_v4 = vmax.f32 %v3323_v9, 0.0 }
 0x33a   :  { %v3342_v39 = vmax.f32 %v3326_v60, 0.0  ;;  %v3381_v60 = vld [vmem:[#allocation4 + $0x50] sm:$0xff] }
 0x33b   :  { %v3340_v7 = vmax.f32 %v3324_v29, 0.0 }
 0x33c   :  { %v3352_v59 = vpack.c.bf16 %v3342_v39, %v3341_v0  ;;  %v3379_v0 = vld [vmem:[#allocation4 + $0x40] sm:$0xff] }
 0x33d   :  { %v3351_v12 = vpack.c.bf16 %v3340_v7, %v3339_v4  ;;  %v4479_v20 = vpop.f32.mrb[20].mxu0  ;;  %v3382_v7 = vld [vmem:[#allocation4 + $0x58] sm:$0xff] }
 0x33e   :  { %v3329_v34 = vadd.f32 %v4479_v20, %v3759_v13  ;;  %v3253_v41 = vpop.f32.mrb[21].mxu0 }
 0x33f   :  { %v3327_v15 = vadd.f32 %v3759_v13, %v3253_v41  ;;  %v4480_v56 = vpop.f32.mrb[22].mxu0  ;;  %4505 = vmatprep.mubr.bf16.mxu1 %v3351_v12 }
 0x340   :  { %v3330_v21 = vadd.f32 %v4480_v56, %v3759_v13  ;;  %v3256_v28 = vpop.f32.mrb[23].mxu0  ;;  %4506 = vmatmul.mubr.bf16.gmra.mrb[16].mxu1 %v3352_v59  ;;  %v3345_v26 = vmax.f32 %v3329_v34, 0.0  ;;  %v3380_v34 = vld [vmem:[#allocation4 + $0x48] sm:$0xff] }
 0x341   :  { %v3328_v1 = vadd.f32 %v3759_v13, %v3256_v28  ;;  %v3343_v38 = vmax.f32 %v3327_v15, 0.0  ;;  %v3374_v13 = vld [vmem:[#allocation4 + $0x18] sm:$0xff] }
 0x342   :  { %v3346_v58 = vmax.f32 %v3330_v21, 0.0 }
 0x343   :  { %v3344_v11 = vmax.f32 %v3328_v1, 0.0 }
 0x344   :  { %v3354_v31 = vpack.c.bf16 %v3346_v58, %v3345_v26 }
 0x345   :  { %v3353_v6 = vpack.c.bf16 %v3344_v11, %v3343_v38  ;;  %v3385_v11 = vld [vmem:[#allocation4 + $0x70] sm:$0xff] }
 0x347   :  { %4509 = vmatprep.mubr.bf16.mxu1 %v3353_v6 }
 0x348   :  { %4510 = vmatmul.mubr.bf16.gmra.mrb[20].mxu1 %v3354_v31 }
 0x402   :  { %v4499_v57 = vpop.f32.mrb[8].mxu1 }
 0x403   :  { %v3485_v55 = vadd.f32 %v4499_v57, %v5393_v61  ;;  %v3476_v8 = vpop.f32.mrb[9].mxu1 }
 0x404   :  { %v3477_v40 = vadd.f32 %v5393_v61, %v3476_v8  ;;  %v4500_v16 = vpop.f32.mrb[10].mxu1 }
 0x405   :  { %v3541_v22 = vadd.f32 %v3485_v55, %v3373_v23  ;;  %v3488_v18 = vadd.f32 %v4500_v16, %v5393_v61  ;;  %v3479_v53 = vpop.f32.mrb[11].mxu1  ;;  %v3383_v23 = vld [vmem:[#allocation4 + $0x60] sm:$0xff]  ;;  %v3384_v16 = vld [vmem:[#allocation4 + $0x68] sm:$0xff] }
 0x406   :  { %v3539_v62 = vadd.f32 %v3477_v40, %v3371_v25  ;;  %v3480_v50 = vadd.f32 %v5393_v61, %v3479_v53  ;;  %v3386_v25 = vld [vmem:[#allocation4 + $0x78] sm:$0xff] }
 0x407   :  { %v3557_v2 = vmax.f32 %v3541_v22, 0.0  ;;  %v3542_v47 = vadd.f32 %v3488_v18, %v3374_v13 }
 0x408   :  { %v3555_v43 = vmax.f32 %v3539_v62, 0.0  ;;  %v3540_v49 = vadd.f32 %v3480_v50, %v3372_v19 }
 0x409   :  { %3573 = vst [vmem:[#allocation12 + $0x10] sm:$0xff] %v3557_v2  ;;  %v3558_v3 = vmax.f32 %v3542_v47, 0.0 }
 0x40a   :  { %3571 = vst [vmem:[#allocation12] sm:$0xff] %v3555_v43  ;;  %v3556_v17 = vmax.f32 %v3540_v49, 0.0  ;;  %v4503_v44 = vpop.f32.mrb[12].mxu1 }
 0x40b   :  { %3574 = vst [vmem:[#allocation12 + $0x18] sm:$0xff] %v3558_v3  ;;  %v3501_v48 = vadd.f32 %v4503_v44, %v5393_v61  ;;  %v3492_v5 = vpop.f32.mrb[13].mxu1 }
 0x40c   :  { %3572 = vst [vmem:[#allocation12 + $0x8] sm:$0xff] %v3556_v17  ;;  %v3493_v10 = vadd.f32 %v5393_v61, %v3492_v5  ;;  %v4504_v30 = vpop.f32.mrb[14].mxu1 }
 0x40d   :  { %v3545_v46 = vadd.f32 %v3501_v48, %v3377_v52  ;;  %v3504_v35 = vadd.f32 %v4504_v30, %v5393_v61  ;;  %v3495_v51 = vpop.f32.mrb[15].mxu1 }
 0x40e   :  { %v3543_v54 = vadd.f32 %v3493_v10, %v3375_v63  ;;  %v3496_v24 = vadd.f32 %v5393_v61, %v3495_v51 }
 0x40f   :  { %v3561_v42 = vmax.f32 %v3545_v46, 0.0  ;;  %v3546_v45 = vadd.f32 %v3504_v35, %v3378_v27 }
 0x410   :  { %v3559_v36 = vmax.f32 %v3543_v54, 0.0  ;;  %v3544_v33 = vadd.f32 %v3496_v24, %v3376_v37 }
 0x411   :  { %3577 = vst [vmem:[#allocation12 + $0x30] sm:$0xff] %v3561_v42  ;;  %v3562_v9 = vmax.f32 %v3546_v45, 0.0 }
 0x412   :  { %3575 = vst [vmem:[#allocation12 + $0x20] sm:$0xff] %v3559_v36  ;;  %v3560_v14 = vmax.f32 %v3544_v33, 0.0 }
 0x413   :  { %3578 = vst [vmem:[#allocation12 + $0x38] sm:$0xff] %v3562_v9  ;;  %v4507_v32 = vpop.f32.mrb[16].mxu1 }
 0x414   :  { %3576 = vst [vmem:[#allocation12 + $0x28] sm:$0xff] %v3560_v14  ;;  %v3517_v29 = vadd.f32 %v4507_v32, %v5393_v61  ;;  %v3508_v39 = vpop.f32.mrb[17].mxu1 }
 0x415   :  { %v3509_v4 = vadd.f32 %v5393_v61, %v3508_v39  ;;  %v4508_v59 = vpop.f32.mrb[18].mxu1 }
 0x416   :  { %v3549_v12 = vadd.f32 %v3517_v29, %v3381_v60  ;;  %v3520_v20 = vadd.f32 %v4508_v59, %v5393_v61  ;;  %v3511_v41 = vpop.f32.mrb[19].mxu1 }
 0x417   :  { %v3547_v15 = vadd.f32 %v3509_v4, %v3379_v0  ;;  %v3512_v56 = vadd.f32 %v5393_v61, %v3511_v41 }
 0x418   :  { %v3565_v21 = vmax.f32 %v3549_v12, 0.0  ;;  %v3550_v28 = vadd.f32 %v3520_v20, %v3382_v7 }
 0x419   :  { %v3563_v1 = vmax.f32 %v3547_v15, 0.0  ;;  %v3548_v26 = vadd.f32 %v3512_v56, %v3380_v34 }
 0x41a   :  { %3581 = vst [vmem:[#allocation12 + $0x50] sm:$0xff] %v3565_v21  ;;  %v3566_v58 = vmax.f32 %v3550_v28, 0.0 }
 0x41b   :  { %3579 = vst [vmem:[#allocation12 + $0x40] sm:$0xff] %v3563_v1  ;;  %v3564_v38 = vmax.f32 %v3548_v26, 0.0  ;;  %v4511_v31 = vpop.f32.mrb[20].mxu1 }
 0x41c   :  { %3582 = vst [vmem:[#allocation12 + $0x58] sm:$0xff] %v3566_v58  ;;  %v3533_v6 = vadd.f32 %v4511_v31, %v5393_v61  ;;  %v3524_v57 = vpop.f32.mrb[21].mxu1 }
 0x41d   :  { %3580 = vst [vmem:[#allocation12 + $0x48] sm:$0xff] %v3564_v38  ;;  %v3525_v55 = vadd.f32 %v5393_v61, %v3524_v57  ;;  %v4512_v8 = vpop.f32.mrb[22].mxu1 }
 0x41e   :  { %v3553_v40 = vadd.f32 %v3533_v6, %v3385_v11  ;;  %v3536_v13 = vadd.f32 %v4512_v8, %v5393_v61  ;;  %v3527_v22 = vpop.f32.mrb[23].mxu1 }
 0x41f   :  { %v3551_v18 = vadd.f32 %v3525_v55, %v3383_v23  ;;  %v3528_v19 = vadd.f32 %v5393_v61, %v3527_v22 }
 0x420   :  { %v3569_v53 = vmax.f32 %v3553_v40, 0.0  ;;  %v3554_v62 = vadd.f32 %v3536_v13, %v3386_v25 }
 0x421   :  { %v3567_v50 = vmax.f32 %v3551_v18, 0.0  ;;  %v3552_v2 = vadd.f32 %v3528_v19, %v3384_v16 }
 0x422   :  { %3585 = vst [vmem:[#allocation12 + $0x70] sm:$0xff] %v3569_v53  ;;  %v3570_v47 = vmax.f32 %v3554_v62, 0.0 }
 0x423   :  { %3583 = vst [vmem:[#allocation12 + $0x60] sm:$0xff] %v3567_v50  ;;  %v3568_v43 = vmax.f32 %v3552_v2, 0.0 }
 0x424   :  { %3586 = vst [vmem:[#allocation12 + $0x78] sm:$0xff] %v3570_v47 }
 0x425   :  { %3584 = vst [vmem:[#allocation12 + $0x68] sm:$0xff] %v3568_v43 }
 0x426   :  { %4911 = shalt.err (!%p4908_p8)
}
 0x427   :  { %s4912_s14 = scalar_lea.hbm %s5433_s7, 2048 }
 0x428   :  { %p4913_p9 = scmp.ne.s32.totalorder %s5433_s7, %s4912_s14  ;;  %p4916_p10 = scmp.lt.u32.totalorder %s4912_s14, %s5433_s7 }
 0x42a   :  { %p4918_p11 = pnand %p4916_p10, %p4913_p9 }
 0x42c   :  { %4921 = shalt.err (!%p4918_p11)
}
 0x42d   :  { %3598 = dma.vmem_to_hbm [thread:$0]  %s3593_s8, 2048, %s5433_s7, [#allocation6], %s4934_s1, %s4934_s1, %s4935_s25  }
 0x42e   :  { %4928 = dma.done.wait [#allocation6], 2048  }
 0x42f   :  { %4929 = vsyncadd [#allocation6], 4294965248 }
 0x430   :  { %3602 = vsyncpa [#allocation5], 1 }
 0x431   :  { %3603 = vsyncpa [#allocation8], 1 }
 0x432   :  { %3604 = vsyncpa [#allocation11], 1 }
 0x433   :  { %3605 = vsyncpa [#allocation6], 1 }

</bundles_post_ra>
